<compile_context>
chip_gen: v6e
topology: v6e:2x2x1
jax: 0.10.0
libtpu: 0.0.40
codegen_flags: <defaults>
</compile_context>

<pallas_src>
import math

import jax
import jax.numpy as jnp
from jax.experimental import pallas as pl
from jax.experimental.pallas import tpu as pltpu


def _make_mha_kernel(n_rows: int, d_embed: int, n_heads: int, d_head: int):
    """n_rows = B*S (batch folded into the block)."""
    E = d_embed
    DH = d_head

    def kernel(xt_ref, bias_ref, wqkvt_ref, bqkvt_ref, wo_ref, bo_ref, o_ref):
        # Fused Q/K/V projection for all heads and all B*S rows, transposed so the
        # feature (head) axis is on sublanes: (3E, E) @ (E, BS) -> (3E, BS).
        qkv_t = (jnp.dot(wqkvt_ref[...], xt_ref[...],
                         preferred_element_type=jnp.float32)
                 + bqkvt_ref[...])                    # (3E, BS) f32, bias lane-broadcast
        qkv_t = qkv_t.astype(jnp.bfloat16)

        bias = bias_ref[...]                          # (BS, BS) f32 additive mask
        wo = wo_ref[...]                              # (E, E) bf16

        acc = jnp.zeros((n_rows, E), jnp.float32)     # fused output-projection accumulator
        for h in range(n_heads):                      # static unroll, n_heads is small
            # 16-row tile-aligned sublane slices (no lane shuffles).
            qh_t = qkv_t[h * DH:(h + 1) * DH, :]                      # (DH, BS)
            kh_t = qkv_t[E + h * DH:E + (h + 1) * DH, :]              # (DH, BS)
            vh_t = qkv_t[2 * E + h * DH:2 * E + (h + 1) * DH, :]      # (DH, BS)

            # scores[i, j] = sum_d q[i, d] * k[j, d]   (1/sqrt(DH) pre-folded into Wq)
            s = jax.lax.dot_general(qh_t, kh_t, (((0,), (0,)), ((), ())),
                                    preferred_element_type=jnp.float32)  # (BS, BS)
            s = s + bias      # block-diagonal batch mask + key mask (0 / -1e9)

            # numerically stable softmax in f32; reciprocal on the EUP
            m = jnp.max(s, axis=-1, keepdims=True)
            e = jnp.exp(s - m)
            denom = jnp.sum(e, axis=-1, keepdims=True)
            p = (e * pl.reciprocal(denom, approx=True)).astype(jnp.bfloat16)

            # pv[i, d] = sum_j p[i, j] * v[j, d]
            pv = jax.lax.dot_general(p, vh_t, (((1,), (1,)), ((), ())),
                                     preferred_element_type=jnp.float32)  # (BS, DH)

            # fused output projection, per-head accumulation (no lane concat):
            acc = acc + jnp.dot(pv.astype(jnp.bfloat16),
                                wo[h * DH:(h + 1) * DH, :],
                                preferred_element_type=jnp.float32)        # (BS, E)

        o_ref[...] = (acc + bo_ref[...]).astype(o_ref.dtype)

    return kernel


def masked_multihead_attention(x, mask, wqkv, bqkv, wo, bo, n_heads):
    """x: (B,S,E) f32, mask: (B,S) 0/1. wqkv: (E,3E) cols=[Q heads|K heads|V heads],
    bqkv: (3E,), wo: (E,E), bo: (E,). Returns (B,S,E) f32 — equivalent to
    MaskedMultiHeadedSelfAttention.forward."""
    B, S, E = x.shape
    d_head = E // n_heads
    BS = B * S
    scale = 1.0 / math.sqrt(d_head)

    # Fold the softmax scale into the Q part of the fused QKV weight + bias (host-side, free).
    col_scale = jnp.concatenate([jnp.full((E,), scale, jnp.float32),
                                 jnp.ones((2 * E,), jnp.float32)])
    wqkv_t = (wqkv * col_scale[None, :]).T.astype(jnp.bfloat16)        # (3E, E)
    bqkv_t = (bqkv * col_scale).reshape(3 * E, 1).astype(jnp.float32)  # (3E, 1)

    # Host-side layout plumbing: present x transposed so heads come out on sublanes.
    x_t = x.reshape(BS, E).T.astype(jnp.bfloat16)                      # (E, BS)

    wo_bf = wo.astype(jnp.bfloat16)
    bo2 = bo.reshape(1, E).astype(jnp.float32)

    # Additive mask over the folded (B*S, B*S) score matrix: 0 where the query and key
    # belong to the same batch element AND the key is unmasked, else -1e9.
    bidx = jnp.arange(B)
    same_batch = bidx[:, None, None, None] == bidx[None, None, :, None]   # (B,1,B,1)
    keep = (mask > 0)[None, None, :, :]                                   # (1,1,B,S)
    bias = jnp.where(same_batch & keep, 0.0, -1.0e9).astype(jnp.float32)  # (B,1,B,S)
    bias = jnp.broadcast_to(bias, (B, S, B, S)).reshape(BS, BS)

    # Advisory cost estimate so XLA schedules around this tiny custom call.
    flops = int(2 * BS * E * 3 * E                       # fused QKV projection
                + n_heads * (4 * BS * BS * d_head        # scores + PV
                             + 2 * BS * d_head * E))     # fused output projection
    bytes_accessed = int(x_t.size * 2 + wqkv_t.size * 2 + bqkv_t.size * 4
                         + wo_bf.size * 2 + bo2.size * 4 + bias.size * 4
                         + BS * E * 4)
    cost = pl.CostEstimate(flops=flops,
                           transcendentals=int(n_heads * BS * BS),
                           bytes_accessed=bytes_accessed)

    kernel = _make_mha_kernel(BS, E, n_heads, d_head)

    out2 = pl.pallas_call(
        kernel,
        out_shape=jax.ShapeDtypeStruct((BS, E), jnp.float32),
        grid=(1,),                       # batch folded into the block: single step
        in_specs=[
            pl.BlockSpec((E, BS), lambda i: (0, 0)),          # x^T (bf16)
            pl.BlockSpec((BS, BS), lambda i: (0, 0)),         # additive mask bias
            pl.BlockSpec((3 * E, E), lambda i: (0, 0)),       # fused Wqkv^T (scale folded)
            pl.BlockSpec((3 * E, 1), lambda i: (0, 0)),       # fused bqkv (column vector)
            pl.BlockSpec((E, E), lambda i: (0, 0)),           # Wo
            pl.BlockSpec((1, E), lambda i: (0, 0)),           # bo
        ],
        out_specs=pl.BlockSpec((BS, E), lambda i: (0, 0)),    # lane-dense (BS, 128) slab
        compiler_params=pltpu.CompilerParams(
            dimension_semantics=("arbitrary",)),
        cost_estimate=cost,
    )(x_t, bias, wqkv_t, bqkv_t, wo_bf, bo2)

    return out2.reshape(B, S, E)


def _reference(x, mask, wqkv, bqkv, wo, bo, n_heads):
    """Pure-JAX f32 mirror of the PyTorch module."""
    B, S, E = x.shape
    d_head = E // n_heads
    qkv = jnp.einsum("bse,ef->bsf", x, wqkv) + bqkv
    q_all, k_all, v_all = qkv[..., :E], qkv[..., E:2 * E], qkv[..., 2 * E:]
    outs = []
    m3 = mask.reshape(B, 1, S)
    for h in range(n_heads):
        q = q_all[..., h * d_head:(h + 1) * d_head]
        k = k_all[..., h * d_head:(h + 1) * d_head]
        v = v_all[..., h * d_head:(h + 1) * d_head]
        s = jnp.einsum("bqd,bkd->bqk", q, k) / math.sqrt(d_head)
        s = jnp.where(m3 == 0, -1.0e9, s)
        p = jax.nn.softmax(s, axis=-1)
        outs.append(jnp.einsum("bqk,bkd->bqd", p, v))
    cat = jnp.concatenate(outs, axis=-1)
    return jnp.einsum("bse,ef->bsf", cat, wo) + bo


if __name__ == "__main__":
    B, S, E, NH = 2, 16, 128, 8          # embedding 128, 8 heads -> d_head = 16

    key = jax.random.PRNGKey(0)
    kx, km, k1, k2, k3, k4 = jax.random.split(key, 6)

    x = jax.random.normal(kx, (B, S, E), dtype=jnp.float32)
    mask = (jax.random.uniform(km, (B, S)) > 0.3).astype(jnp.float32)
    mask = mask.at[:, 0].set(1.0)        # ensure no fully-masked row

    # torch.nn.Linear-like uniform init; per-head weights stored pre-transposed and
    # fused: Wqkv columns = [Q heads | K heads | V heads], head h at h*DH:(h+1)*DH.
    bound = 1.0 / math.sqrt(E)
    wqkv = jax.random.uniform(k1, (E, 3 * E), minval=-bound, maxval=bound,
                              dtype=jnp.float32)
    bqkv = jax.random.uniform(k2, (3 * E,), minval=-bound, maxval=bound,
                              dtype=jnp.float32)
    wo = jax.random.uniform(k3, (E, E), minval=-bound, maxval=bound,
                            dtype=jnp.float32)
    bo = jax.random.uniform(k4, (E,), minval=-bound, maxval=bound,
                            dtype=jnp.float32)

    out = masked_multihead_attention(x, mask, wqkv, bqkv, wo, bo, NH)
    out = jax.block_until_ready(out)

    ref = _reference(x, mask, wqkv, bqkv, wo, bo, NH)
    assert out.shape == (B, S, E)
    # bf16 MXU inputs + approx reciprocal -> compare with a bf16-appropriate tolerance
    assert jnp.allclose(out, ref, atol=5e-2, rtol=5e-2), (
        "mismatch vs reference, max abs err = %f" % float(jnp.max(jnp.abs(out - ref))))

    print("KERNEL_OK")
</pallas_src>

<mosaic_0001>
module attributes {stable_mosaic.version = 11 : i64} {
  func.func @kernel(%arg0: i32, %arg1: memref<128x32xbf16, #tpu.memory_space<vmem>>, %arg2: memref<32x32xf32, #tpu.memory_space<vmem>>, %arg3: memref<384x128xbf16, #tpu.memory_space<vmem>>, %arg4: memref<384x1xf32, #tpu.memory_space<vmem>>, %arg5: memref<128x128xbf16, #tpu.memory_space<vmem>>, %arg6: memref<1x128xf32, #tpu.memory_space<vmem>>, %arg7: memref<32x128xf32, #tpu.memory_space<vmem>>) attributes {dimension_semantics = [#tpu.dimension_semantics<arbitrary>], iteration_bounds = array<i64: 1>, scalar_prefetch = 0 : i64, scratch_operands = 0 : i64, tpu.core_type = #tpu.core_type<tc>, window_params = [{pipeline_mode = #tpu.pipeline_mode<synchronous>, transform_indices = @transform_0, window_bounds = array<i64: 128, 32>}, {pipeline_mode = #tpu.pipeline_mode<synchronous>, transform_indices = @transform_1, window_bounds = array<i64: 32, 32>}, {pipeline_mode = #tpu.pipeline_mode<synchronous>, transform_indices = @transform_2, window_bounds = array<i64: 384, 128>}, {pipeline_mode = #tpu.pipeline_mode<synchronous>, transform_indices = @transform_3, window_bounds = array<i64: 384, 1>}, {pipeline_mode = #tpu.pipeline_mode<synchronous>, transform_indices = @transform_4, window_bounds = array<i64: 128, 128>}, {pipeline_mode = #tpu.pipeline_mode<synchronous>, transform_indices = @transform_5, window_bounds = array<i64: 1, 128>}, {pipeline_mode = #tpu.pipeline_mode<synchronous>, transform_indices = @transform_6, window_bounds = array<i64: 32, 128>}]} {
    %c0 = arith.constant 0 : index
    %c0_0 = arith.constant 0 : index
    %0 = vector.load %arg3[%c0, %c0_0] : memref<384x128xbf16, #tpu.memory_space<vmem>>, vector<384x128xbf16>
    %c0_1 = arith.constant 0 : index
    %c0_2 = arith.constant 0 : index
    %1 = vector.load %arg1[%c0_1, %c0_2] : memref<128x32xbf16, #tpu.memory_space<vmem>>, vector<128x32xbf16>
    %cst = arith.constant dense<0.000000e+00> : vector<384x32xf32>
    %2 = tpu.matmul %0, %1, %cst {dimension_numbers = #tpu.dot_dimension_numbers<[1], [0], [0], [1], [0, 0, 1, 1], [], []>} : vector<384x128xbf16>, vector<128x32xbf16>, vector<384x32xf32> -> vector<384x32xf32>
    %c0_3 = arith.constant 0 : index
    %c0_4 = arith.constant 0 : index
    %3 = vector.load %arg4[%c0_3, %c0_4] : memref<384x1xf32, #tpu.memory_space<vmem>>, vector<384x1xf32>
    %4 = vector.broadcast %3 : vector<384x1xf32> to vector<384x32xf32>
    %5 = arith.addf %2, %4 : vector<384x32xf32>
    %6 = arith.truncf %5 : vector<384x32xf32> to vector<384x32xbf16>
    %c0_5 = arith.constant 0 : index
    %c0_6 = arith.constant 0 : index
    %7 = vector.load %arg2[%c0_5, %c0_6] : memref<32x32xf32, #tpu.memory_space<vmem>>, vector<32x32xf32>
    %c0_7 = arith.constant 0 : index
    %c0_8 = arith.constant 0 : index
    %8 = vector.load %arg5[%c0_7, %c0_8] : memref<128x128xbf16, #tpu.memory_space<vmem>>, vector<128x128xbf16>
    %cst_9 = arith.constant 0.000000e+00 : f32
    %9 = vector.broadcast %cst_9 : f32 to vector<32x128xf32>
    %10 = vector.extract_strided_slice %6 {offsets = [0, 0], sizes = [16, 32], strides = [1, 1]} : vector<384x32xbf16> to vector<16x32xbf16>
    %11 = vector.extract_strided_slice %6 {offsets = [128, 0], sizes = [16, 32], strides = [1, 1]} : vector<384x32xbf16> to vector<16x32xbf16>
    %12 = vector.extract_strided_slice %6 {offsets = [256, 0], sizes = [16, 32], strides = [1, 1]} : vector<384x32xbf16> to vector<16x32xbf16>
    %cst_10 = arith.constant dense<0.000000e+00> : vector<32x32xf32>
    %13 = tpu.matmul %10, %11, %cst_10 {dimension_numbers = #tpu.dot_dimension_numbers<[0], [0], [1], [1], [0, 1, 1, 1], [], []>} : vector<16x32xbf16>, vector<16x32xbf16>, vector<32x32xf32> -> vector<32x32xf32>
    %14 = arith.addf %13, %7 : vector<32x32xf32>
    %cst_11 = arith.constant dense<0xFF800000> : vector<32xf32>
    %15 = vector.multi_reduction <maximumf>, %14, %cst_11 [1] : vector<32x32xf32> to vector<32xf32>
    %16 = vector.shape_cast %15 : vector<32xf32> to vector<32x1xf32>
    %17 = vector.broadcast %16 : vector<32x1xf32> to vector<32x32xf32>
    %18 = arith.subf %14, %17 : vector<32x32xf32>
    %19 = math.exp %18 : vector<32x32xf32>
    %cst_12 = arith.constant dense<0.000000e+00> : vector<32xf32>
    %20 = vector.multi_reduction <add>, %19, %cst_12 [1] : vector<32x32xf32> to vector<32xf32>
    %21 = vector.shape_cast %20 : vector<32xf32> to vector<32x1xf32>
    %22 = tpu.reciprocal %21 {approx = true} : vector<32x1xf32> -> vector<32x1xf32>
    %23 = vector.broadcast %22 : vector<32x1xf32> to vector<32x32xf32>
    %24 = arith.mulf %19, %23 : vector<32x32xf32>
    %25 = arith.truncf %24 : vector<32x32xf32> to vector<32x32xbf16>
    %cst_13 = arith.constant dense<0.000000e+00> : vector<32x16xf32>
    %26 = tpu.matmul %25, %12, %cst_13 {dimension_numbers = #tpu.dot_dimension_numbers<[1], [1], [0], [0], [0, 0, 1, 0], [], []>} : vector<32x32xbf16>, vector<16x32xbf16>, vector<32x16xf32> -> vector<32x16xf32>
    %27 = arith.truncf %26 : vector<32x16xf32> to vector<32x16xbf16>
    %28 = vector.extract_strided_slice %8 {offsets = [0, 0], sizes = [16, 128], strides = [1, 1]} : vector<128x128xbf16> to vector<16x128xbf16>
    %cst_14 = arith.constant dense<0.000000e+00> : vector<32x128xf32>
    %29 = tpu.matmul %27, %28, %cst_14 {dimension_numbers = #tpu.dot_dimension_numbers<[1], [0], [0], [1], [0, 0, 1, 1], [], []>} : vector<32x16xbf16>, vector<16x128xbf16>, vector<32x128xf32> -> vector<32x128xf32>
    %30 = arith.addf %9, %29 : vector<32x128xf32>
    %31 = vector.extract_strided_slice %6 {offsets = [16, 0], sizes = [16, 32], strides = [1, 1]} : vector<384x32xbf16> to vector<16x32xbf16>
    %32 = vector.extract_strided_slice %6 {offsets = [144, 0], sizes = [16, 32], strides = [1, 1]} : vector<384x32xbf16> to vector<16x32xbf16>
    %33 = vector.extract_strided_slice %6 {offsets = [272, 0], sizes = [16, 32], strides = [1, 1]} : vector<384x32xbf16> to vector<16x32xbf16>
    %cst_15 = arith.constant dense<0.000000e+00> : vector<32x32xf32>
    %34 = tpu.matmul %31, %32, %cst_15 {dimension_numbers = #tpu.dot_dimension_numbers<[0], [0], [1], [1], [0, 1, 1, 1], [], []>} : vector<16x32xbf16>, vector<16x32xbf16>, vector<32x32xf32> -> vector<32x32xf32>
    %35 = arith.addf %34, %7 : vector<32x32xf32>
    %cst_16 = arith.constant dense<0xFF800000> : vector<32xf32>
    %36 = vector.multi_reduction <maximumf>, %35, %cst_16 [1] : vector<32x32xf32> to vector<32xf32>
    %37 = vector.shape_cast %36 : vector<32xf32> to vector<32x1xf32>
    %38 = vector.broadcast %37 : vector<32x1xf32> to vector<32x32xf32>
    %39 = arith.subf %35, %38 : vector<32x32xf32>
    %40 = math.exp %39 : vector<32x32xf32>
    %cst_17 = arith.constant dense<0.000000e+00> : vector<32xf32>
    %41 = vector.multi_reduction <add>, %40, %cst_17 [1] : vector<32x32xf32> to vector<32xf32>
    %42 = vector.shape_cast %41 : vector<32xf32> to vector<32x1xf32>
    %43 = tpu.reciprocal %42 {approx = true} : vector<32x1xf32> -> vector<32x1xf32>
    %44 = vector.broadcast %43 : vector<32x1xf32> to vector<32x32xf32>
    %45 = arith.mulf %40, %44 : vector<32x32xf32>
    %46 = arith.truncf %45 : vector<32x32xf32> to vector<32x32xbf16>
    %cst_18 = arith.constant dense<0.000000e+00> : vector<32x16xf32>
    %47 = tpu.matmul %46, %33, %cst_18 {dimension_numbers = #tpu.dot_dimension_numbers<[1], [1], [0], [0], [0, 0, 1, 0], [], []>} : vector<32x32xbf16>, vector<16x32xbf16>, vector<32x16xf32> -> vector<32x16xf32>
    %48 = arith.truncf %47 : vector<32x16xf32> to vector<32x16xbf16>
    %49 = vector.extract_strided_slice %8 {offsets = [16, 0], sizes = [16, 128], strides = [1, 1]} : vector<128x128xbf16> to vector<16x128xbf16>
    %cst_19 = arith.constant dense<0.000000e+00> : vector<32x128xf32>
    %50 = tpu.matmul %48, %49, %cst_19 {dimension_numbers = #tpu.dot_dimension_numbers<[1], [0], [0], [1], [0, 0, 1, 1], [], []>} : vector<32x16xbf16>, vector<16x128xbf16>, vector<32x128xf32> -> vector<32x128xf32>
    %51 = arith.addf %30, %50 : vector<32x128xf32>
    %52 = vector.extract_strided_slice %6 {offsets = [32, 0], sizes = [16, 32], strides = [1, 1]} : vector<384x32xbf16> to vector<16x32xbf16>
    %53 = vector.extract_strided_slice %6 {offsets = [160, 0], sizes = [16, 32], strides = [1, 1]} : vector<384x32xbf16> to vector<16x32xbf16>
    %54 = vector.extract_strided_slice %6 {offsets = [288, 0], sizes = [16, 32], strides = [1, 1]} : vector<384x32xbf16> to vector<16x32xbf16>
    %cst_20 = arith.constant dense<0.000000e+00> : vector<32x32xf32>
    %55 = tpu.matmul %52, %53, %cst_20 {dimension_numbers = #tpu.dot_dimension_numbers<[0], [0], [1], [1], [0, 1, 1, 1], [], []>} : vector<16x32xbf16>, vector<16x32xbf16>, vector<32x32xf32> -> vector<32x32xf32>
    %56 = arith.addf %55, %7 : vector<32x32xf32>
    %cst_21 = arith.constant dense<0xFF800000> : vector<32xf32>
    %57 = vector.multi_reduction <maximumf>, %56, %cst_21 [1] : vector<32x32xf32> to vector<32xf32>
    %58 = vector.shape_cast %57 : vector<32xf32> to vector<32x1xf32>
    %59 = vector.broadcast %58 : vector<32x1xf32> to vector<32x32xf32>
    %60 = arith.subf %56, %59 : vector<32x32xf32>
    %61 = math.exp %60 : vector<32x32xf32>
    %cst_22 = arith.constant dense<0.000000e+00> : vector<32xf32>
    %62 = vector.multi_reduction <add>, %61, %cst_22 [1] : vector<32x32xf32> to vector<32xf32>
    %63 = vector.shape_cast %62 : vector<32xf32> to vector<32x1xf32>
    %64 = tpu.reciprocal %63 {approx = true} : vector<32x1xf32> -> vector<32x1xf32>
    %65 = vector.broadcast %64 : vector<32x1xf32> to vector<32x32xf32>
    %66 = arith.mulf %61, %65 : vector<32x32xf32>
    %67 = arith.truncf %66 : vector<32x32xf32> to vector<32x32xbf16>
    %cst_23 = arith.constant dense<0.000000e+00> : vector<32x16xf32>
    %68 = tpu.matmul %67, %54, %cst_23 {dimension_numbers = #tpu.dot_dimension_numbers<[1], [1], [0], [0], [0, 0, 1, 0], [], []>} : vector<32x32xbf16>, vector<16x32xbf16>, vector<32x16xf32> -> vector<32x16xf32>
    %69 = arith.truncf %68 : vector<32x16xf32> to vector<32x16xbf16>
    %70 = vector.extract_strided_slice %8 {offsets = [32, 0], sizes = [16, 128], strides = [1, 1]} : vector<128x128xbf16> to vector<16x128xbf16>
    %cst_24 = arith.constant dense<0.000000e+00> : vector<32x128xf32>
    %71 = tpu.matmul %69, %70, %cst_24 {dimension_numbers = #tpu.dot_dimension_numbers<[1], [0], [0], [1], [0, 0, 1, 1], [], []>} : vector<32x16xbf16>, vector<16x128xbf16>, vector<32x128xf32> -> vector<32x128xf32>
    %72 = arith.addf %51, %71 : vector<32x128xf32>
    %73 = vector.extract_strided_slice %6 {offsets = [48, 0], sizes = [16, 32], strides = [1, 1]} : vector<384x32xbf16> to vector<16x32xbf16>
    %74 = vector.extract_strided_slice %6 {offsets = [176, 0], sizes = [16, 32], strides = [1, 1]} : vector<384x32xbf16> to vector<16x32xbf16>
    %75 = vector.extract_strided_slice %6 {offsets = [304, 0], sizes = [16, 32], strides = [1, 1]} : vector<384x32xbf16> to vector<16x32xbf16>
    %cst_25 = arith.constant dense<0.000000e+00> : vector<32x32xf32>
    %76 = tpu.matmul %73, %74, %cst_25 {dimension_numbers = #tpu.dot_dimension_numbers<[0], [0], [1], [1], [0, 1, 1, 1], [], []>} : vector<16x32xbf16>, vector<16x32xbf16>, vector<32x32xf32> -> vector<32x32xf32>
    %77 = arith.addf %76, %7 : vector<32x32xf32>
    %cst_26 = arith.constant dense<0xFF800000> : vector<32xf32>
    %78 = vector.multi_reduction <maximumf>, %77, %cst_26 [1] : vector<32x32xf32> to vector<32xf32>
    %79 = vector.shape_cast %78 : vector<32xf32> to vector<32x1xf32>
    %80 = vector.broadcast %79 : vector<32x1xf32> to vector<32x32xf32>
    %81 = arith.subf %77, %80 : vector<32x32xf32>
    %82 = math.exp %81 : vector<32x32xf32>
    %cst_27 = arith.constant dense<0.000000e+00> : vector<32xf32>
    %83 = vector.multi_reduction <add>, %82, %cst_27 [1] : vector<32x32xf32> to vector<32xf32>
    %84 = vector.shape_cast %83 : vector<32xf32> to vector<32x1xf32>
    %85 = tpu.reciprocal %84 {approx = true} : vector<32x1xf32> -> vector<32x1xf32>
    %86 = vector.broadcast %85 : vector<32x1xf32> to vector<32x32xf32>
    %87 = arith.mulf %82, %86 : vector<32x32xf32>
    %88 = arith.truncf %87 : vector<32x32xf32> to vector<32x32xbf16>
    %cst_28 = arith.constant dense<0.000000e+00> : vector<32x16xf32>
    %89 = tpu.matmul %88, %75, %cst_28 {dimension_numbers = #tpu.dot_dimension_numbers<[1], [1], [0], [0], [0, 0, 1, 0], [], []>} : vector<32x32xbf16>, vector<16x32xbf16>, vector<32x16xf32> -> vector<32x16xf32>
    %90 = arith.truncf %89 : vector<32x16xf32> to vector<32x16xbf16>
    %91 = vector.extract_strided_slice %8 {offsets = [48, 0], sizes = [16, 128], strides = [1, 1]} : vector<128x128xbf16> to vector<16x128xbf16>
    %cst_29 = arith.constant dense<0.000000e+00> : vector<32x128xf32>
    %92 = tpu.matmul %90, %91, %cst_29 {dimension_numbers = #tpu.dot_dimension_numbers<[1], [0], [0], [1], [0, 0, 1, 1], [], []>} : vector<32x16xbf16>, vector<16x128xbf16>, vector<32x128xf32> -> vector<32x128xf32>
    %93 = arith.addf %72, %92 : vector<32x128xf32>
    %94 = vector.extract_strided_slice %6 {offsets = [64, 0], sizes = [16, 32], strides = [1, 1]} : vector<384x32xbf16> to vector<16x32xbf16>
    %95 = vector.extract_strided_slice %6 {offsets = [192, 0], sizes = [16, 32], strides = [1, 1]} : vector<384x32xbf16> to vector<16x32xbf16>
    %96 = vector.extract_strided_slice %6 {offsets = [320, 0], sizes = [16, 32], strides = [1, 1]} : vector<384x32xbf16> to vector<16x32xbf16>
    %cst_30 = arith.constant dense<0.000000e+00> : vector<32x32xf32>
    %97 = tpu.matmul %94, %95, %cst_30 {dimension_numbers = #tpu.dot_dimension_numbers<[0], [0], [1], [1], [0, 1, 1, 1], [], []>} : vector<16x32xbf16>, vector<16x32xbf16>, vector<32x32xf32> -> vector<32x32xf32>
    %98 = arith.addf %97, %7 : vector<32x32xf32>
    %cst_31 = arith.constant dense<0xFF800000> : vector<32xf32>
    %99 = vector.multi_reduction <maximumf>, %98, %cst_31 [1] : vector<32x32xf32> to vector<32xf32>
    %100 = vector.shape_cast %99 : vector<32xf32> to vector<32x1xf32>
    %101 = vector.broadcast %100 : vector<32x1xf32> to vector<32x32xf32>
    %102 = arith.subf %98, %101 : vector<32x32xf32>
    %103 = math.exp %102 : vector<32x32xf32>
    %cst_32 = arith.constant dense<0.000000e+00> : vector<32xf32>
    %104 = vector.multi_reduction <add>, %103, %cst_32 [1] : vector<32x32xf32> to vector<32xf32>
    %105 = vector.shape_cast %104 : vector<32xf32> to vector<32x1xf32>
    %106 = tpu.reciprocal %105 {approx = true} : vector<32x1xf32> -> vector<32x1xf32>
    %107 = vector.broadcast %106 : vector<32x1xf32> to vector<32x32xf32>
    %108 = arith.mulf %103, %107 : vector<32x32xf32>
    %109 = arith.truncf %108 : vector<32x32xf32> to vector<32x32xbf16>
    %cst_33 = arith.constant dense<0.000000e+00> : vector<32x16xf32>
    %110 = tpu.matmul %109, %96, %cst_33 {dimension_numbers = #tpu.dot_dimension_numbers<[1], [1], [0], [0], [0, 0, 1, 0], [], []>} : vector<32x32xbf16>, vector<16x32xbf16>, vector<32x16xf32> -> vector<32x16xf32>
    %111 = arith.truncf %110 : vector<32x16xf32> to vector<32x16xbf16>
    %112 = vector.extract_strided_slice %8 {offsets = [64, 0], sizes = [16, 128], strides = [1, 1]} : vector<128x128xbf16> to vector<16x128xbf16>
    %cst_34 = arith.constant dense<0.000000e+00> : vector<32x128xf32>
    %113 = tpu.matmul %111, %112, %cst_34 {dimension_numbers = #tpu.dot_dimension_numbers<[1], [0], [0], [1], [0, 0, 1, 1], [], []>} : vector<32x16xbf16>, vector<16x128xbf16>, vector<32x128xf32> -> vector<32x128xf32>
    %114 = arith.addf %93, %113 : vector<32x128xf32>
    %115 = vector.extract_strided_slice %6 {offsets = [80, 0], sizes = [16, 32], strides = [1, 1]} : vector<384x32xbf16> to vector<16x32xbf16>
    %116 = vector.extract_strided_slice %6 {offsets = [208, 0], sizes = [16, 32], strides = [1, 1]} : vector<384x32xbf16> to vector<16x32xbf16>
    %117 = vector.extract_strided_slice %6 {offsets = [336, 0], sizes = [16, 32], strides = [1, 1]} : vector<384x32xbf16> to vector<16x32xbf16>
    %cst_35 = arith.constant dense<0.000000e+00> : vector<32x32xf32>
    %118 = tpu.matmul %115, %116, %cst_35 {dimension_numbers = #tpu.dot_dimension_numbers<[0], [0], [1], [1], [0, 1, 1, 1], [], []>} : vector<16x32xbf16>, vector<16x32xbf16>, vector<32x32xf32> -> vector<32x32xf32>
    %119 = arith.addf %118, %7 : vector<32x32xf32>
    %cst_36 = arith.constant dense<0xFF800000> : vector<32xf32>
    %120 = vector.multi_reduction <maximumf>, %119, %cst_36 [1] : vector<32x32xf32> to vector<32xf32>
    %121 = vector.shape_cast %120 : vector<32xf32> to vector<32x1xf32>
    %122 = vector.broadcast %121 : vector<32x1xf32> to vector<32x32xf32>
    %123 = arith.subf %119, %122 : vector<32x32xf32>
    %124 = math.exp %123 : vector<32x32xf32>
    %cst_37 = arith.constant dense<0.000000e+00> : vector<32xf32>
    %125 = vector.multi_reduction <add>, %124, %cst_37 [1] : vector<32x32xf32> to vector<32xf32>
    %126 = vector.shape_cast %125 : vector<32xf32> to vector<32x1xf32>
    %127 = tpu.reciprocal %126 {approx = true} : vector<32x1xf32> -> vector<32x1xf32>
    %128 = vector.broadcast %127 : vector<32x1xf32> to vector<32x32xf32>
    %129 = arith.mulf %124, %128 : vector<32x32xf32>
    %130 = arith.truncf %129 : vector<32x32xf32> to vector<32x32xbf16>
    %cst_38 = arith.constant dense<0.000000e+00> : vector<32x16xf32>
    %131 = tpu.matmul %130, %117, %cst_38 {dimension_numbers = #tpu.dot_dimension_numbers<[1], [1], [0], [0], [0, 0, 1, 0], [], []>} : vector<32x32xbf16>, vector<16x32xbf16>, vector<32x16xf32> -> vector<32x16xf32>
    %132 = arith.truncf %131 : vector<32x16xf32> to vector<32x16xbf16>
    %133 = vector.extract_strided_slice %8 {offsets = [80, 0], sizes = [16, 128], strides = [1, 1]} : vector<128x128xbf16> to vector<16x128xbf16>
    %cst_39 = arith.constant dense<0.000000e+00> : vector<32x128xf32>
    %134 = tpu.matmul %132, %133, %cst_39 {dimension_numbers = #tpu.dot_dimension_numbers<[1], [0], [0], [1], [0, 0, 1, 1], [], []>} : vector<32x16xbf16>, vector<16x128xbf16>, vector<32x128xf32> -> vector<32x128xf32>
    %135 = arith.addf %114, %134 : vector<32x128xf32>
    %136 = vector.extract_strided_slice %6 {offsets = [96, 0], sizes = [16, 32], strides = [1, 1]} : vector<384x32xbf16> to vector<16x32xbf16>
    %137 = vector.extract_strided_slice %6 {offsets = [224, 0], sizes = [16, 32], strides = [1, 1]} : vector<384x32xbf16> to vector<16x32xbf16>
    %138 = vector.extract_strided_slice %6 {offsets = [352, 0], sizes = [16, 32], strides = [1, 1]} : vector<384x32xbf16> to vector<16x32xbf16>
    %cst_40 = arith.constant dense<0.000000e+00> : vector<32x32xf32>
    %139 = tpu.matmul %136, %137, %cst_40 {dimension_numbers = #tpu.dot_dimension_numbers<[0], [0], [1], [1], [0, 1, 1, 1], [], []>} : vector<16x32xbf16>, vector<16x32xbf16>, vector<32x32xf32> -> vector<32x32xf32>
    %140 = arith.addf %139, %7 : vector<32x32xf32>
    %cst_41 = arith.constant dense<0xFF800000> : vector<32xf32>
    %141 = vector.multi_reduction <maximumf>, %140, %cst_41 [1] : vector<32x32xf32> to vector<32xf32>
    %142 = vector.shape_cast %141 : vector<32xf32> to vector<32x1xf32>
    %143 = vector.broadcast %142 : vector<32x1xf32> to vector<32x32xf32>
    %144 = arith.subf %140, %143 : vector<32x32xf32>
    %145 = math.exp %144 : vector<32x32xf32>
    %cst_42 = arith.constant dense<0.000000e+00> : vector<32xf32>
    %146 = vector.multi_reduction <add>, %145, %cst_42 [1] : vector<32x32xf32> to vector<32xf32>
    %147 = vector.shape_cast %146 : vector<32xf32> to vector<32x1xf32>
    %148 = tpu.reciprocal %147 {approx = true} : vector<32x1xf32> -> vector<32x1xf32>
    %149 = vector.broadcast %148 : vector<32x1xf32> to vector<32x32xf32>
    %150 = arith.mulf %145, %149 : vector<32x32xf32>
    %151 = arith.truncf %150 : vector<32x32xf32> to vector<32x32xbf16>
    %cst_43 = arith.constant dense<0.000000e+00> : vector<32x16xf32>
    %152 = tpu.matmul %151, %138, %cst_43 {dimension_numbers = #tpu.dot_dimension_numbers<[1], [1], [0], [0], [0, 0, 1, 0], [], []>} : vector<32x32xbf16>, vector<16x32xbf16>, vector<32x16xf32> -> vector<32x16xf32>
    %153 = arith.truncf %152 : vector<32x16xf32> to vector<32x16xbf16>
    %154 = vector.extract_strided_slice %8 {offsets = [96, 0], sizes = [16, 128], strides = [1, 1]} : vector<128x128xbf16> to vector<16x128xbf16>
    %cst_44 = arith.constant dense<0.000000e+00> : vector<32x128xf32>
    %155 = tpu.matmul %153, %154, %cst_44 {dimension_numbers = #tpu.dot_dimension_numbers<[1], [0], [0], [1], [0, 0, 1, 1], [], []>} : vector<32x16xbf16>, vector<16x128xbf16>, vector<32x128xf32> -> vector<32x128xf32>
    %156 = arith.addf %135, %155 : vector<32x128xf32>
    %157 = vector.extract_strided_slice %6 {offsets = [112, 0], sizes = [16, 32], strides = [1, 1]} : vector<384x32xbf16> to vector<16x32xbf16>
    %158 = vector.extract_strided_slice %6 {offsets = [240, 0], sizes = [16, 32], strides = [1, 1]} : vector<384x32xbf16> to vector<16x32xbf16>
    %159 = vector.extract_strided_slice %6 {offsets = [368, 0], sizes = [16, 32], strides = [1, 1]} : vector<384x32xbf16> to vector<16x32xbf16>
    %cst_45 = arith.constant dense<0.000000e+00> : vector<32x32xf32>
    %160 = tpu.matmul %157, %158, %cst_45 {dimension_numbers = #tpu.dot_dimension_numbers<[0], [0], [1], [1], [0, 1, 1, 1], [], []>} : vector<16x32xbf16>, vector<16x32xbf16>, vector<32x32xf32> -> vector<32x32xf32>
    %161 = arith.addf %160, %7 : vector<32x32xf32>
    %cst_46 = arith.constant dense<0xFF800000> : vector<32xf32>
    %162 = vector.multi_reduction <maximumf>, %161, %cst_46 [1] : vector<32x32xf32> to vector<32xf32>
    %163 = vector.shape_cast %162 : vector<32xf32> to vector<32x1xf32>
    %164 = vector.broadcast %163 : vector<32x1xf32> to vector<32x32xf32>
    %165 = arith.subf %161, %164 : vector<32x32xf32>
    %166 = math.exp %165 : vector<32x32xf32>
    %cst_47 = arith.constant dense<0.000000e+00> : vector<32xf32>
    %167 = vector.multi_reduction <add>, %166, %cst_47 [1] : vector<32x32xf32> to vector<32xf32>
    %168 = vector.shape_cast %167 : vector<32xf32> to vector<32x1xf32>
    %169 = tpu.reciprocal %168 {approx = true} : vector<32x1xf32> -> vector<32x1xf32>
    %170 = vector.broadcast %169 : vector<32x1xf32> to vector<32x32xf32>
    %171 = arith.mulf %166, %170 : vector<32x32xf32>
    %172 = arith.truncf %171 : vector<32x32xf32> to vector<32x32xbf16>
    %cst_48 = arith.constant dense<0.000000e+00> : vector<32x16xf32>
    %173 = tpu.matmul %172, %159, %cst_48 {dimension_numbers = #tpu.dot_dimension_numbers<[1], [1], [0], [0], [0, 0, 1, 0], [], []>} : vector<32x32xbf16>, vector<16x32xbf16>, vector<32x16xf32> -> vector<32x16xf32>
    %174 = arith.truncf %173 : vector<32x16xf32> to vector<32x16xbf16>
    %175 = vector.extract_strided_slice %8 {offsets = [112, 0], sizes = [16, 128], strides = [1, 1]} : vector<128x128xbf16> to vector<16x128xbf16>
    %cst_49 = arith.constant dense<0.000000e+00> : vector<32x128xf32>
    %176 = tpu.matmul %174, %175, %cst_49 {dimension_numbers = #tpu.dot_dimension_numbers<[1], [0], [0], [1], [0, 0, 1, 1], [], []>} : vector<32x16xbf16>, vector<16x128xbf16>, vector<32x128xf32> -> vector<32x128xf32>
    %177 = arith.addf %156, %176 : vector<32x128xf32>
    %c0_50 = arith.constant 0 : index
    %c0_51 = arith.constant 0 : index
    %178 = vector.load %arg6[%c0_50, %c0_51] : memref<1x128xf32, #tpu.memory_space<vmem>>, vector<1x128xf32>
    %179 = vector.broadcast %178 : vector<1x128xf32> to vector<32x128xf32>
    %180 = arith.addf %177, %179 : vector<32x128xf32>
    %c0_52 = arith.constant 0 : index
    %c0_53 = arith.constant 0 : index
    %181 = vector.load %arg7[%c0_52, %c0_53] : memref<32x128xf32, #tpu.memory_space<vmem>>, vector<32x128xf32>
    tpu.vector_store %arg7[%c0_52, %c0_53], %180 {strides = array<i32>} : memref<32x128xf32, #tpu.memory_space<vmem>>, vector<32x128xf32>,
    return
  }
  func.func @transform_0(%arg0: i32) -> (i32, i32) {
    %c0_i32 = arith.constant 0 : i32
    %c0_i32_0 = arith.constant 0 : i32
    %c0_i32_1 = arith.constant 0 : i32
    return %c0_i32, %c0_i32_0 : i32, i32
  }
  func.func @transform_1(%arg0: i32) -> (i32, i32) {
    %c0_i32 = arith.constant 0 : i32
    %c0_i32_0 = arith.constant 0 : i32
    %c0_i32_1 = arith.constant 0 : i32
    return %c0_i32, %c0_i32_0 : i32, i32
  }
  func.func @transform_2(%arg0: i32) -> (i32, i32) {
    %c0_i32 = arith.constant 0 : i32
    %c0_i32_0 = arith.constant 0 : i32
    %c0_i32_1 = arith.constant 0 : i32
    return %c0_i32, %c0_i32_0 : i32, i32
  }
  func.func @transform_3(%arg0: i32) -> (i32, i32) {
    %c0_i32 = arith.constant 0 : i32
    %c0_i32_0 = arith.constant 0 : i32
    %c0_i32_1 = arith.constant 0 : i32
    return %c0_i32, %c0_i32_0 : i32, i32
  }
  func.func @transform_4(%arg0: i32) -> (i32, i32) {
    %c0_i32 = arith.constant 0 : i32
    %c0_i32_0 = arith.constant 0 : i32
    %c0_i32_1 = arith.constant 0 : i32
    return %c0_i32, %c0_i32_0 : i32, i32
  }
  func.func @transform_5(%arg0: i32) -> (i32, i32) {
    %c0_i32 = arith.constant 0 : i32
    %c0_i32_0 = arith.constant 0 : i32
    %c0_i32_1 = arith.constant 0 : i32
    return %c0_i32, %c0_i32_0 : i32, i32
  }
  func.func @transform_6(%arg0: i32) -> (i32, i32) {
    %c0_i32 = arith.constant 0 : i32
    %c0_i32_0 = arith.constant 0 : i32
    %c0_i32_1 = arith.constant 0 : i32
    return %c0_i32, %c0_i32_0 : i32, i32
  }
}

</mosaic_0001>

<bundles_post_ra>
// kernel: tpu_custom_call.1
= control target key start
LH: loop header
LB: loop body
LE: loop exit
PB: predicated region body
PF: predicated region fallthrough
CT: control target
= control target key end

     0   :  { %v3408_v2 = vmov 0   ;;  %s4129_s0 = inlined_call_operand.vmem [shape: bf16[128,32], index: 0, kind: input, shape index: {}]   ;;  %s4130_s1 = inlined_call_operand.vmem [shape: f32[32,32], index: 1, kind: input, shape index: {}]   ;;  %s4131_s2 = inlined_call_operand.vmem [shape: bf16[384,128], index: 2, kind: input, shape index: {}]   ;;  %s4132_s3 = inlined_call_operand.vmem [shape: f32[384,1], index: 3, kind: input, shape index: {}]   ;;  %s4133_s4 = inlined_call_operand.vmem [shape: bf16[128,128], index: 4, kind: input, shape index: {}]   ;;  %s4134_s5 = inlined_call_operand.vmem [shape: f32[1,128], index: 5, kind: input, shape index: {}]   ;;  %s4135_s6 = inlined_call_operand.hbm [shape: f32[32,128], index: 6, kind: output, shape index: {}]  }
   0x1   :  { %v3214_v0 = vld [vmem:[%s4129_s0 + $0x38] sm:$0xff]   ;;  %v3215_v1 = vld [vmem:[%s4129_s0 + $0x30] sm:$0xff]   ;;  %3212 = vset.pattern.permute.xlu0 %v3408_v2  ;;  %3213 = vset.pattern.permute.xlu1 %v3408_v2  ;;  %v3216_v3 = vld [vmem:[%s4129_s0 + $0x28] sm:$0xff]  }
   0x2   :  { %2992 = vmatprep.subr.bf16.mxu0 %v3214_v0  ;;  %v3217_v4 = vld [vmem:[%s4129_s0 + $0x20] sm:$0xff]   ;;  %v3218_v7 = vld [vmem:[%s4129_s0 + $0x18] sm:$0xff]   ;;  %v90_v8 = vld [vmem:[%s4132_s3 + $0x8] sm:$0xff] }
   0x3   :  { %2993 = vmatpush3.bf16.msra.mxu0 %v3214_v0  ;;  %v3222_v5 = vld [vmem:[%s4131_s2] sm:$0xff]   ;;  %v3219_v9 = vld [vmem:[%s4129_s0 + $0x10] sm:$0xff]   ;;  %v3220_v10 = vld [vmem:[%s4129_s0 + $0x8] sm:$0xff]  }
   0x4   :  { %2994 = vmatprep.subr.bf16.mxu0 %v3215_v1  ;;  %3008 = vmatprep.mubr.bf16.mxu0 %v3222_v5  ;;  %v89_v6 = vld [vmem:[%s4132_s3] sm:$0xff]  ;;  %v106_v12 = vld [vmem:[%s4132_s3 + $0x88] sm:$0xff]  ;;  %v3224_v15 = vld [vmem:[%s4131_s2 + $0x10] sm:$0xff]  }
   0x5   :  { %139 = vperm.xlu0 %3212, %v89_v6   ;;  %v105_v11 = vld [vmem:[%s4132_s3 + $0x80] sm:$0xff]  ;;  %v3223_v14 = vld [vmem:[%s4131_s2 + $0x8] sm:$0xff]  }
   0x6   :  { %219 = vperm.xlu1 %3213, %v105_v11   ;;  %v3221_v13 = vld [vmem:[%s4129_s0] sm:$0xff]  }
   0x7   :  { %2995 = vmatpush3.bf16.msra.mxu0 %v3215_v1 }
   0x8   :  { %2996 = vmatprep.subr.bf16.mxu0 %v3216_v3 }
   0x9   :  { %144 = vperm.xlu0 %3212, %v90_v8  }
   0xa   :  { %224 = vperm.xlu1 %3213, %v106_v12  }
   0xb   :  { %2997 = vmatpush3.bf16.msra.mxu0 %v3216_v3 }
   0xc   :  { %2998 = vmatprep.subr.bf16.mxu0 %v3217_v4 }
   0xf   :  { %2999 = vmatpush3.bf16.msra.mxu0 %v3217_v4 }
  0x10   :  { %3000 = vmatprep.subr.bf16.mxu0 %v3218_v7 }
  0x13   :  { %3001 = vmatpush3.bf16.msra.mxu0 %v3218_v7 }
  0x14   :  { %3002 = vmatprep.subr.bf16.mxu0 %v3219_v9 }
  0x17   :  { %3003 = vmatpush3.bf16.msra.mxu0 %v3219_v9 }
  0x18   :  { %3004 = vmatprep.subr.bf16.mxu0 %v3220_v10 }
  0x1b   :  { %3005 = vmatpush3.bf16.msra.mxu0 %v3220_v10 }
  0x1c   :  { %3006 = vmatprep.subr.bf16.mxu0 %v3221_v13 }
  0x1f   :  { %3007 = vmatpush3.bf16.msra.mxu0 %v3221_v13 }
  0x22   :  { %3009 = vmatmul.mubr.bf16.vlgmr.msra.gmra.mxu0 %v3223_v14 }
  0x23   :  { %11 = vsyncpa [#allocation3], 0  ;;  %3012 = vmatprep.mubr.bf16.mxu0 %v3224_v15  ;;  %v3225_v16 = vld [vmem:[%s4131_s2 + $0x18] sm:$0xff]   ;;  %v3226_v17 = vld [vmem:[%s4131_s2 + $0x20] sm:$0xff]   ;;  %vm854_vm0 = vcmask 130048   ;;  %vm910_vm1 = vcmask 261120  }
  0x24   :  { %v3227_v18 = vld [vmem:[%s4131_s2 + $0x28] sm:$0xff]   ;;  %v3228_v19 = vld [vmem:[%s4131_s2 + $0x30] sm:$0xff]   ;;  %v3229_v20 = vld [vmem:[%s4131_s2 + $0x38] sm:$0xff]  }
  0x25   :  { %v3230_v21 = vld [vmem:[%s4131_s2 + $0x40] sm:$0xff]   ;;  %v3231_v22 = vld [vmem:[%s4131_s2 + $0x48] sm:$0xff]   ;;  %v3232_v23 = vld [vmem:[%s4131_s2 + $0x50] sm:$0xff]  }
  0x26   :  { %v3233_v24 = vld [vmem:[%s4131_s2 + $0x58] sm:$0xff]   ;;  %v3234_v25 = vld [vmem:[%s4131_s2 + $0x60] sm:$0xff]   ;;  %v3235_v26 = vld [vmem:[%s4131_s2 + $0x68] sm:$0xff]  }
  0x27   :  { %v3236_v27 = vld [vmem:[%s4131_s2 + $0x70] sm:$0xff]   ;;  %v3237_v30 = vld [vmem:[%s4131_s2 + $0x78] sm:$0xff]   ;;  %v3238_v32 = vld [vmem:[%s4131_s2 + $0x80] sm:$0xff]  }
  0x28   :  { %v3239_v40 = vld [vmem:[%s4131_s2 + $0x88] sm:$0xff]   ;;  %v3574_v0 = vld [vmem:[%s4130_s1] sm:$0xff]  ;;  %v3579_v1 = vld [vmem:[%s4130_s1 + $0x10] sm:$0xff] }
  0x29   :  { %v3585_v5 = vld [vmem:[%s4130_s1 + $0x8] sm:$0xff]  ;;  %v3592_v8 = vld [vmem:[%s4130_s1 + $0x18] sm:$0xff]  ;;  %v91_v15 = vld [vmem:[%s4132_s3 + $0x10] sm:$0xff] }
  0x2a   :  { %3013 = vmatmul.mubr.bf16.gmra.mxu0 %v3225_v16  ;;  %v92_v16 = vld [vmem:[%s4132_s3 + $0x18] sm:$0xff] }
  0x2b   :  { %3016 = vmatprep.mubr.bf16.mxu0 %v3226_v17  ;;  %v121_v17 = vld [vmem:[%s4132_s3 + $0x100] sm:$0xff] }
  0x32   :  { %3017 = vmatmul.mubr.bf16.gmra.mxu0 %v3227_v18 }
  0x33   :  { %3020 = vmatprep.mubr.bf16.mxu0 %v3228_v19 }
  0x3a   :  { %3021 = vmatmul.mubr.bf16.gmra.mxu0 %v3229_v20 }
  0x3b   :  { %3024 = vmatprep.mubr.bf16.mxu0 %v3230_v21 }
  0x42   :  { %3025 = vmatmul.mubr.bf16.gmra.mxu0 %v3231_v22 }
  0x43   :  { %3028 = vmatprep.mubr.bf16.mxu0 %v3232_v23 }
  0x4a   :  { %3029 = vmatmul.mubr.bf16.gmra.mxu0 %v3233_v24 }
  0x4b   :  { %3032 = vmatprep.mubr.bf16.mxu0 %v3234_v25 }
  0x52   :  { %3033 = vmatmul.mubr.bf16.gmra.mxu0 %v3235_v26 }
  0x53   :  { %3036 = vmatprep.mubr.bf16.mxu0 %v3236_v27 }
  0x5a   :  { %3037 = vmatmul.mubr.bf16.gmra.mxu0 %v3237_v30 }
  0x5b   :  { %3040 = vmatprep.mubr.bf16.mxu0 %v3238_v32 }
  0x62   :  { %3041 = vmatmul.mubr.bf16.gmra.mxu0 %v3239_v40 }
  0x80   :  { %v140_v28 = vpop.permute.xlu0 %139 }
  0x81   :  { %v220_v52 = vpop.permute.xlu1 %219 }
  0x84   :  { %v145_v34 = vpop.permute.xlu0 %144 }
  0x85   :  { %v225_v56 = vpop.permute.xlu1 %224 }
  0xe2   :  { %v3528_v29 = vpop.f32.mrf.mxu0 }
  0xe4   :  { %v603_v31 = vpop.f32.mrf.mxu0 }
  0xe5   :  { %v604_v36 = vadd.f32 %v603_v31, %v140_v28 }
  0xe6   :  { %v3536_v33 = vpop.f32.mrf.mxu0 }
  0xe8   :  { %v606_v35 = vpop.f32.mrf.mxu0 }
  0xe9   :  { %v607_v37 = vadd.f32 %v606_v35, %v145_v34 }
  0xea   :  { %v3538_v38 = vpop.f32.mrf.mxu0 }
  0xeb   :  { %v794_v39 = vpack.c.bf16 %v607_v37, %v604_v36 }
  0xec   :  { %v3543_v41 = vpop.f32.mrf.mxu0 }
  0xed   :  { %838 = vxpose.xlu0.c.b16.start.end [1/1] (short) (narrow) %v794_v39, 32 }
  0xee   :  { %v3545_v42 = vpop.f32.mrf.mxu0 }
  0xf0   :  { %v3547_v43 = vpop.f32.mrf.mxu0 }
  0xf2   :  { %v3549_v44 = vpop.f32.mrf.mxu0 }
  0xf4   :  { %v3551_v45 = vpop.f32.mrf.mxu0 }
  0xf6   :  { %v3553_v46 = vpop.f32.mrf.mxu0 }
  0xf8   :  { %v3555_v47 = vpop.f32.mrf.mxu0 }
  0xfa   :  { %v3557_v48 = vpop.f32.mrf.mxu0 }
  0xfc   :  { %v3559_v49 = vpop.f32.mrf.mxu0 }
  0xfe   :  { %v3561_v50 = vpop.f32.mrf.mxu0 }
 0x100   :  { %v3563_v51 = vpop.f32.mrf.mxu0 }
 0x102   :  { %v3565_v53 = vpop.f32.mrf.mxu0 }
 0x104   :  { %v667_v54 = vpop.f32.mrf.mxu0 }
 0x105   :  { %v668_v57 = vadd.f32 %v667_v54, %v220_v52  ;;  %v107_v52 = vld [vmem:[%s4132_s3 + $0x90] sm:$0xff]  ;;  %v108_v54 = vld [vmem:[%s4132_s3 + $0x98] sm:$0xff] }
 0x106   :  { %v3567_v55 = vpop.f32.mrf.mxu0 }
 0x108   :  { %v670_v58 = vpop.f32.mrf.mxu0 }
 0x109   :  { %v671_v59 = vadd.f32 %v670_v58, %v225_v56  ;;  %v122_v56 = vld [vmem:[%s4132_s3 + $0x108] sm:$0xff] }
 0x10b   :  { %v802_v60 = vpack.c.bf16 %v671_v59, %v668_v57 }
 0x10d   :  { %3056 = vmatprep.subr.bf16.mxu1 %v802_v60 }
 0x10e   :  { %3057 = vmatpush3.bf16.msra.mxu1 %v802_v60 }
 0x14f   :  { %v846_v61 = vpop.trf.xlu0 }
 0x150   :  { %3058 = vmatprep.mubr.msk.bf16.mxu1 %vm854_vm0, %v846_v61 }
 0x153   :  { %v847_v62 = vpop.trf.xlu0 }
 0x154   :  { %3059 = vmatmul.mubr.msk.bf16.vlgmr.msra.gmra.mxu1 %vm854_vm0, %v847_v62  ;;  %v3632_v62 = vpop.f32.mrf.mxu0 }
 0x214   :  { %v3060_v63 = vpop.f32.mrf.mxu1 }
 0x215   :  { %v904_v6 = vadd.f32 %v3060_v63, %v3579_v1  ;;  %v3634_v63 = vpop.f32.mrf.mxu0 }
 0x216   :  { %v895_v2 = vpop.f32.mrf.mxu1 }
 0x217   :  { %v896_v3 = vadd.f32 %v895_v2, %v3574_v0  ;;  %v917_v13 = vsel %vm910_vm1, %v904_v6, -inf  ;;  %v3636_v2 = vpop.f32.mrf.mxu0 }
 0x218   :  { %v3061_v4 = vpop.f32.mrf.mxu1 }
 0x219   :  { %v911_v7 = vsel %vm910_vm1, %v896_v3, -inf  ;;  %v907_v11 = vadd.f32 %v3061_v4, %v3592_v8 }
 0x21a   :  { %v898_v9 = vpop.f32.mrf.mxu1  ;;  %912 = vmax.xlane.f32.xlu1 %v911_v7 }
 0x21b   :  { %v899_v10 = vadd.f32 %v898_v9, %v3585_v5  ;;  %v920_v14 = vsel %vm910_vm1, %v907_v11, -inf }
 0x21d   :  { %v914_v12 = vsel %vm910_vm1, %v899_v10, -inf }
 0x21e   :  { %915 = vmax.xlane.f32.xlu0 %v914_v12  ;;  %918 = vmax.xlane.f32.xlu1 %v917_v13 }
 0x222   :  { %921 = vmax.xlane.f32.xlu1 %v920_v14 }
 0x233   :  { %149 = vperm.xlu1 %3213, %v91_v15  }
 0x234   :  { %154 = vperm.xlu0 %3212, %v92_v16  }
 0x237   :  { %299 = vperm.xlu1 %3213, %v121_v17  }
 0x2a3   :  { %v913_v18 = vpop.xlane.xlu1 %912 }
 0x2a4   :  { %v923_v19 = vsub.f32 %v896_v3, %v913_v18  ;;  %v3638_v3 = vpop.f32.mrf.mxu0 }
 0x2a6   :  { %v927_v25 = vmul.f32 1.442695, %v923_v19  ;;  %v3640_v4 = vpop.f32.mrf.mxu0 }
 0x2a7   :  { %v916_v20 = vpop.xlane.xlu0 %915  ;;  %v919_v21 = vpop.xlane.xlu1 %918 }
 0x2a8   :  { %v925_v22 = vsub.f32 %v904_v6, %v919_v21  ;;  %v924_v23 = vsub.f32 %v899_v10, %v916_v20  ;;  %v3642_v6 = vpop.f32.mrf.mxu0 }
 0x2aa   :  { %v931_v24 = vmul.f32 1.442695, %v925_v22  ;;  %v929_v28 = vmul.f32 1.442695, %v924_v23  ;;  %v3644_v7 = vpop.f32.mrf.mxu0 }
 0x2ab   :  { %v922_v26 = vpop.xlane.xlu1 %921 }
 0x2ac   :  { %v926_v27 = vsub.f32 %v907_v11, %v922_v26  ;;  %3254 = vpow2.f32 %v931_v24  ;;  %v3646_v9 = vpop.f32.mrf.mxu0 }
 0x2ad   :  { %3256 = vpow2.f32 %v927_v25 }
 0x2ae   :  { %v933_v30 = vmul.f32 1.442695, %v926_v27 }
 0x2af   :  { %v155_v57 = vpop.permute.xlu0 %154  ;;  %v150_v58 = vpop.permute.xlu1 %149 }
 0x2b0   :  { %3258 = vpow2.f32 %v933_v30  ;;  %v615_v59 = vadd.f32 %v3536_v33, %v155_v57  ;;  %v612_v60 = vadd.f32 %v3528_v29, %v150_v58  ;;  %v3648_v33 = vpop.f32.mrf.mxu0 }
 0x2b1   :  { %3260 = vpow2.f32 %v929_v28 }
 0x2b2   :  { %v795_v61 = vpack.c.bf16 %v615_v59, %v612_v60  ;;  %v3650_v29 = vpop.f32.mrf.mxu0 }
 0x2b3   :  { %v300_v10 = vpop.permute.xlu1 %299 }
 0x2b4   :  { %v3652_v11 = vpop.f32.mrf.mxu0 }
 0x2b6   :  { %v3654_v13 = vpop.f32.mrf.mxu0 }
 0x2b8   :  { %v3656_v16 = vpop.f32.mrf.mxu0 }
 0x2b9   :  { %v3608_v31 = vpop.eup %3254 }
 0x2ba   :  { %v941_v32 = vsel %vm910_vm1, %v3608_v31, 0.0  ;;  %v3612_v34 = vpop.eup %3256  ;;  %v731_v19 = vpop.f32.mrf.mxu0 }
 0x2bb   :  { %942 = vadd.xlane.f32.xlu1 %v941_v32  ;;  %v935_v39 = vsel %vm910_vm1, %v3612_v34, 0.0  ;;  %v732_v24 = vadd.f32 %v731_v19, %v300_v10 }
 0x2bc   :  { %v3658_v20 = vpop.f32.mrf.mxu0 }
 0x2bd   :  { %v3614_v35 = vpop.eup %3258 }
 0x2be   :  { %v944_v36 = vsel %vm910_vm1, %v3614_v35, 0.0  ;;  %v3261_v37 = vpop.eup %3260  ;;  %v734_v22 = vpop.f32.mrf.mxu0 }
 0x2bf   :  { %945 = vadd.xlane.f32.xlu0 %v944_v36  ;;  %936 = vadd.xlane.f32.xlu1 %v935_v39  ;;  %v938_v40 = vsel %vm910_vm1, %v3261_v37, 0.0 }
 0x2c3   :  { %939 = vadd.xlane.f32.xlu0 %v938_v40 }
 0x2d0   :  { %229 = vperm.xlu1 %3213, %v107_v52  }
 0x2d4   :  { %234 = vperm.xlu1 %3213, %v108_v54  }
 0x2d9   :  { %304 = vperm.xlu0 %3212, %v122_v56  }
 0x2f7   :  { %1017 = vxpose.xlu0.c.b16.start.end [1/1] (short) (narrow) %v795_v61, 32 }
 0x344   :  { %v943_v12 = vpop.xlane.xlu1 %942 }
 0x348   :  { %v946_v14 = vpop.xlane.xlu0 %945  ;;  %v937_v15 = vpop.xlane.xlu1 %936 }
 0x349   :  { %3262 = vrcp.f32 %v946_v14 }
 0x34a   :  { %3264 = vrcp.f32 %v937_v15 }
 0x34b   :  { %3266 = vrcp.f32 %v943_v12 }
 0x34c   :  { %v940_v17 = vpop.xlane.xlu0 %939  ;;  %v230_v18 = vpop.permute.xlu1 %229 }
 0x34d   :  { %3268 = vrcp.f32 %v940_v17  ;;  %v676_v28 = vadd.f32 %v3565_v53, %v230_v18 }
 0x350   :  { %v235_v21 = vpop.permute.xlu1 %234 }
 0x351   :  { %v679_v25 = vadd.f32 %v3567_v55, %v235_v21 }
 0x353   :  { %v803_v39 = vpack.c.bf16 %v679_v25, %v676_v28 }
 0x354   :  { %v305_v23 = vpop.permute.xlu0 %304 }
 0x355   :  { %v735_v26 = vadd.f32 %v734_v22, %v305_v23 }
 0x356   :  { %v3263_v27 = vpop.eup %3262 }
 0x357   :  { %v810_v30 = vpack.c.bf16 %v735_v26, %v732_v24  ;;  %v3265_v32 = vpop.eup %3264  ;;  %v954_v55 = vmul.f32 %v3263_v27, %v3614_v35 }
 0x358   :  { %v3267_v36 = vpop.eup %3266  ;;  %v951_v54 = vmul.f32 %v3265_v32, %v3612_v34 }
 0x359   :  { %3200 = vmatprep.subr.msk.bf16.mxu1 %vm910_vm1, %v810_v30  ;;  %v964_v40 = vsel %vm910_vm1, %v810_v30, 0  ;;  %v953_v58 = vmul.f32 %v3267_v36, %v3608_v31  ;;  %v1025_v59 = vpop.trf.xlu0 }
 0x35a   :  { %v3269_v52 = vpop.eup %3268  ;;  %3063 = vmatpush3.bf16.xpose.msra.mxu1 %v964_v40 }
 0x35b   :  { %3068 = vmatprep.subr.bf16.mxu1 %v803_v39  ;;  %v952_v56 = vmul.f32 %v3269_v52, %v3261_v37  ;;  %v956_v53 = vpack.c.bf16 %v954_v55, %v953_v58 }
 0x35d   :  { %v955_v57 = vpack.c.bf16 %v952_v56, %v951_v54  ;;  %v1026_v60 = vpop.trf.xlu0 }
 0x35f   :  { %3064 = vmatprep.mubr.msk.bf16.mxu1 %vm910_vm1, %v955_v57 }
 0x361   :  { %3065 = vmatmul.mubr.msk.bf16.vlgmr.msra.gmra.mxu1 %vm910_vm1, %v956_v53 }
 0x362   :  { %3069 = vmatpush3.bf16.msra.mxu1 %v803_v39  ;;  %3070 = vmatprep.mubr.msk.bf16.mxu1 %vm854_vm0, %v1025_v59 }
 0x369   :  { %3071 = vmatmul.mubr.msk.bf16.vlgmr.msra.gmra.mxu1 %vm854_vm0, %v1026_v60 }
 0x421   :  { %v3671_v61 = vpop.f32.mrf.mxu1 }
 0x423   :  { %v3673_v34 = vpop.f32.mrf.mxu1 }
 0x425   :  { %v3675_v35 = vpop.f32.mrf.mxu1 }
 0x426   :  { %v1016_v31 = vpack.c.bf16 %v3675_v35, %v3671_v61 }
 0x427   :  { %v3679_v37 = vpop.f32.mrf.mxu1 }
 0x428   :  { %v1015_v10 = vpack.c.bf16 %v3679_v37, %v3673_v34  ;;  %v3243_v34 = vld [vmem:[%s4131_s2 + $0x98] sm:$0xff]  }
 0x429   :  { %v3072_v12 = vpop.f32.mrf.mxu1 }
 0x42a   :  { %v1082_v18 = vadd.f32 %v3072_v12, %v3579_v1 }
 0x42b   :  { %v1073_v14 = vpop.f32.mrf.mxu1 }
 0x42c   :  { %v1074_v15 = vadd.f32 %v1073_v14, %v3574_v0  ;;  %v1094_v25 = vsel %vm910_vm1, %v1082_v18, -inf }
 0x42d   :  { %v3073_v17 = vpop.f32.mrf.mxu1 }
 0x42e   :  { %v1088_v19 = vsel %vm910_vm1, %v1074_v15, -inf  ;;  %v1085_v23 = vadd.f32 %v3073_v17, %v3592_v8 }
 0x42f   :  { %v1076_v21 = vpop.f32.mrf.mxu1  ;;  %1089 = vmax.xlane.f32.xlu1 %v1088_v19  ;;  %v93_v19 = vld [vmem:[%s4132_s3 + $0x20] sm:$0xff] }
 0x430   :  { %v1077_v22 = vadd.f32 %v1076_v21, %v3585_v5  ;;  %v1097_v26 = vsel %vm910_vm1, %v1085_v23, -inf  ;;  %v94_v21 = vld [vmem:[%s4132_s3 + $0x28] sm:$0xff] }
 0x432   :  { %v1091_v24 = vsel %vm910_vm1, %v1077_v22, -inf }
 0x433   :  { %1092 = vmax.xlane.f32.xlu0 %v1091_v24  ;;  %1095 = vmax.xlane.f32.xlu1 %v1094_v25  ;;  %v109_v24 = vld [vmem:[%s4132_s3 + $0xa0] sm:$0xff] }
 0x437   :  { %1098 = vmax.xlane.f32.xlu1 %v1097_v26 }
 0x4b8   :  { %v1090_v27 = vpop.xlane.xlu1 %1089 }
 0x4b9   :  { %v1100_v28 = vsub.f32 %v1074_v15, %v1090_v27 }
 0x4bb   :  { %v1104_v52 = vmul.f32 1.442695, %v1100_v28 }
 0x4bc   :  { %v1093_v30 = vpop.xlane.xlu0 %1092  ;;  %v1096_v32 = vpop.xlane.xlu1 %1095 }
 0x4bd   :  { %v1102_v36 = vsub.f32 %v1082_v18, %v1096_v32  ;;  %v1101_v39 = vsub.f32 %v1077_v22, %v1093_v30  ;;  %v123_v18 = vld [vmem:[%s4132_s3 + $0x110] sm:$0xff]  ;;  %v124_v22 = vld [vmem:[%s4132_s3 + $0x118] sm:$0xff] }
 0x4bf   :  { %v1108_v40 = vmul.f32 1.442695, %v1102_v36  ;;  %v1106_v55 = vmul.f32 1.442695, %v1101_v39 }
 0x4c0   :  { %v1099_v54 = vpop.xlane.xlu1 %1098 }
 0x4c1   :  { %v1103_v56 = vsub.f32 %v1085_v23, %v1099_v54  ;;  %3270 = vpow2.f32 %v1108_v40  ;;  %v110_v23 = vld [vmem:[%s4132_s3 + $0xa8] sm:$0xff] }
 0x4c2   :  { %3272 = vpow2.f32 %v1104_v52 }
 0x4c3   :  { %v1110_v57 = vmul.f32 1.442695, %v1103_v56 }
 0x4c5   :  { %3274 = vpow2.f32 %v1110_v57 }
 0x4c6   :  { %3276 = vpow2.f32 %v1106_v55 }
 0x4ce   :  { %v3271_v58 = vpop.eup %3270 }
 0x4cf   :  { %v1118_v53 = vsel %vm910_vm1, %v3271_v58, 0.0  ;;  %v3273_v59 = vpop.eup %3272 }
 0x4d0   :  { %1119 = vadd.xlane.f32.xlu1 %v1118_v53  ;;  %v1112_v15 = vsel %vm910_vm1, %v3273_v59, 0.0 }
 0x4d2   :  { %v3275_v60 = vpop.eup %3274 }
 0x4d3   :  { %v1121_v12 = vsel %vm910_vm1, %v3275_v60, 0.0  ;;  %v3277_v14 = vpop.eup %3276 }
 0x4d4   :  { %1122 = vadd.xlane.f32.xlu0 %v1121_v12  ;;  %1113 = vadd.xlane.f32.xlu1 %v1112_v15  ;;  %v1115_v17 = vsel %vm910_vm1, %v3277_v14, 0.0 }
 0x4d8   :  { %1116 = vadd.xlane.f32.xlu0 %v1115_v17 }
 0x4e5   :  { %309 = vperm.xlu1 %3213, %v123_v18  }
 0x4e9   :  { %159 = vperm.xlu1 %3213, %v93_v19  }
 0x4ed   :  { %164 = vperm.xlu1 %3213, %v94_v21  }
 0x4ee   :  { %314 = vperm.xlu0 %3212, %v124_v22  }
 0x4f1   :  { %244 = vperm.xlu1 %3213, %v110_v23   ;;  %v3241_v23 = vld [vmem:[%s4133_s4] sm:$0xff]  }
 0x4f2   :  { %239 = vperm.xlu0 %3212, %v109_v24  }
 0x559   :  { %v1120_v25 = vpop.xlane.xlu1 %1119 }
 0x55d   :  { %v1123_v26 = vpop.xlane.xlu0 %1122  ;;  %v1114_v27 = vpop.xlane.xlu1 %1113 }
 0x55e   :  { %3278 = vrcp.f32 %v1123_v26 }
 0x55f   :  { %3280 = vrcp.f32 %v1114_v27 }
 0x560   :  { %3282 = vrcp.f32 %v1120_v25 }
 0x561   :  { %v1117_v28 = vpop.xlane.xlu0 %1116  ;;  %v310_v30 = vpop.permute.xlu1 %309 }
 0x562   :  { %3284 = vrcp.f32 %v1117_v28  ;;  %v740_v39 = vadd.f32 %v3656_v16, %v310_v30 }
 0x565   :  { %v160_v32 = vpop.permute.xlu1 %159 }
 0x566   :  { %v620_v54 = vadd.f32 %v3543_v41, %v160_v32 }
 0x569   :  { %v315_v36 = vpop.permute.xlu0 %314  ;;  %v165_v52 = vpop.permute.xlu1 %164 }
 0x56a   :  { %v743_v40 = vadd.f32 %v3658_v20, %v315_v36  ;;  %v623_v56 = vadd.f32 %v3547_v43, %v165_v52  ;;  %v3240_v43 = vld [vmem:[%s4133_s4 + $0x8] sm:$0xff]  }
 0x56b   :  { %v3279_v55 = vpop.eup %3278 }
 0x56c   :  { %v811_v57 = vpack.c.bf16 %v743_v40, %v740_v39  ;;  %v3281_v53 = vpop.eup %3280  ;;  %v796_v12 = vpack.c.bf16 %v623_v56, %v620_v54  ;;  %v1131_v20 = vmul.f32 %v3279_v55, %v3275_v60 }
 0x56d   :  { %v3283_v15 = vpop.eup %3282  ;;  %v1128_v16 = vmul.f32 %v3281_v53, %v3273_v59 }
 0x56e   :  { %3201 = vmatprep.subr.msk.bf16.mxu1 %vm910_vm1, %v811_v57  ;;  %v1141_v17 = vsel %vm910_vm1, %v811_v57, 0  ;;  %1316 = vxpose.xlu0.c.b16.start.end [1/1] (short) (narrow) %v796_v12, 32  ;;  %v1130_v22 = vmul.f32 %v3283_v15, %v3271_v58  ;;  %v245_v58 = vpop.permute.xlu1 %244 }
 0x56f   :  { %v3285_v18 = vpop.eup %3284  ;;  %3075 = vmatpush3.bf16.xpose.msra.mxu1 %v1141_v17  ;;  %v687_v26 = vadd.f32 %v3638_v3, %v245_v58  ;;  %v3242_v3 = vld [vmem:[%s4131_s2 + $0x90] sm:$0xff]  }
 0x570   :  { %v1129_v19 = vmul.f32 %v3285_v18, %v3277_v14  ;;  %v1133_v41 = vpack.c.bf16 %v1131_v20, %v1130_v22  ;;  %3080 = vmatprep.subr.bf16.mxu1 %v3240_v43  ;;  %v240_v14 = vpop.permute.xlu0 %239  ;;  %3044 = vmatprep.mubr.bf16.mxu0 %v3242_v3 }
 0x571   :  { %v684_v25 = vadd.f32 %v3634_v63, %v240_v14  ;;  %3045 = vmatmul.mubr.bf16.gmra.mxu0 %v3243_v34 }
 0x572   :  { %v1132_v21 = vpack.c.bf16 %v1129_v19, %v1128_v16 }
 0x573   :  { %v804_v32 = vpack.c.bf16 %v687_v26, %v684_v25 }
 0x574   :  { %3076 = vmatprep.mubr.msk.bf16.mxu1 %vm910_vm1, %v1132_v21 }
 0x576   :  { %3077 = vmatmul.mubr.msk.bf16.vlgmr.msra.gmra.mxu1 %vm910_vm1, %v1133_v41 }
 0x577   :  { %3081 = vmatpush3.bf16.msra.mxu1 %v3240_v43 }
 0x578   :  { %3086 = vmatprep.subr.bf16.mxu1 %v3241_v23 }
 0x5d0   :  { %v1324_v36 = vpop.trf.xlu0 }
 0x5d4   :  { %v1325_v63 = vpop.trf.xlu0 }
 0x636   :  { %v3078_v59 = vpop.f32.mrf.mxu1 }
 0x638   :  { %v1177_v60 = vpop.f32.mrf.mxu1 }
 0x63a   :  { %v3079_v24 = vpop.f32.mrf.mxu1 }
 0x63b   :  { %v1193_v30 = vpack.c.bf16 %v3079_v24, %v3078_v59 }
 0x63c   :  { %v1180_v27 = vpop.f32.mrf.mxu1 }
 0x63d   :  { %v1192_v28 = vpack.c.bf16 %v1180_v27, %v1177_v60 }
 0x63f   :  { %3082 = vmatprep.mubr.msk.bf16.mxu1 %vm854_vm0, %v1192_v28 }
 0x640   :  { %3083 = vmatmul.mubr.msk.bf16.vlgmr.msra.gmra.mxu1 %vm854_vm0, %v1193_v30 }
 0x641   :  { %3087 = vmatpush3.bf16.msra.mxu1 %v3241_v23  ;;  %3088 = vmatprep.mubr.msk.bf16.mxu1 %vm854_vm0, %v1015_v10 }
 0x642   :  { %3092 = vmatprep.subr.bf16.mxu1 %v804_v32 }
 0x648   :  { %3089 = vmatmul.mubr.msk.bf16.vlgmr.msra.gmra.mxu1 %vm854_vm0, %v1016_v31 }
 0x649   :  { %3093 = vmatpush3.bf16.msra.mxu1 %v804_v32  ;;  %3094 = vmatprep.mubr.msk.bf16.mxu1 %vm854_vm0, %v1324_v36 }
 0x650   :  { %3095 = vmatmul.mubr.msk.bf16.vlgmr.msra.gmra.mxu1 %vm854_vm0, %v1325_v63 }
 0x700   :  { %v3084_v37 = vpop.f32.mrf.mxu1 }
 0x702   :  { %v1240_v61 = vpop.f32.mrf.mxu1 }
 0x704   :  { %v3085_v35 = vpop.f32.mrf.mxu1 }
 0x706   :  { %v1243_v31 = vpop.f32.mrf.mxu1 }
 0x708   :  { %v3090_v10 = vpop.f32.mrf.mxu1 }
 0x709   :  { %v3747_v39 = vadd.f32 %v3090_v10, %v3084_v37  ;;  %v125_v10 = vld [vmem:[%s4132_s3 + $0x120] sm:$0xff] }
 0x70a   :  { %v1301_v40 = vpop.f32.mrf.mxu1 }
 0x70b   :  { %v3749_v52 = vadd.f32 %v1301_v40, %v1240_v61  ;;  %v95_v40 = vld [vmem:[%s4132_s3 + $0x30] sm:$0xff] }
 0x70c   :  { %v3091_v54 = vpop.f32.mrf.mxu1 }
 0x70d   :  { %v3751_v56 = vadd.f32 %v3091_v54, %v3085_v35  ;;  %v96_v54 = vld [vmem:[%s4132_s3 + $0x38] sm:$0xff] }
 0x70e   :  { %v1304_v55 = vpop.f32.mrf.mxu1 }
 0x70f   :  { %v3753_v57 = vadd.f32 %v1304_v55, %v1243_v31  ;;  %v126_v55 = vld [vmem:[%s4132_s3 + $0x128] sm:$0xff] }
 0x710   :  { %v3096_v53 = vpop.f32.mrf.mxu1 }
 0x711   :  { %v1381_v18 = vadd.f32 %v3096_v53, %v3579_v1  ;;  %v112_v53 = vld [vmem:[%s4132_s3 + $0xb8] sm:$0xff] }
 0x712   :  { %v1372_v12 = vpop.f32.mrf.mxu1 }
 0x713   :  { %v1373_v15 = vadd.f32 %v1372_v12, %v3574_v0  ;;  %v1393_v41 = vsel %vm910_vm1, %v1381_v18, -inf  ;;  %v111_v12 = vld [vmem:[%s4132_s3 + $0xb0] sm:$0xff] }
 0x714   :  { %v3097_v17 = vpop.f32.mrf.mxu1 }
 0x715   :  { %v1387_v16 = vsel %vm910_vm1, %v1373_v15, -inf  ;;  %v1384_v21 = vadd.f32 %v3097_v17, %v3592_v8  ;;  %v3788_v17 = vpop.f32.mrf.mxu0 }
 0x716   :  { %v1375_v19 = vpop.f32.mrf.mxu1  ;;  %1388 = vmax.xlane.f32.xlu1 %v1387_v16 }
 0x717   :  { %v1376_v20 = vadd.f32 %v1375_v19, %v3585_v5  ;;  %v1396_v43 = vsel %vm910_vm1, %v1384_v21, -inf  ;;  %v747_v19 = vpop.f32.mrf.mxu0 }
 0x719   :  { %v1390_v22 = vsel %vm910_vm1, %v1376_v20, -inf }
 0x71a   :  { %1391 = vmax.xlane.f32.xlu0 %v1390_v22  ;;  %1394 = vmax.xlane.f32.xlu1 %v1393_v41  ;;  %v3790_v22 = vpop.f32.mrf.mxu0 }
 0x71e   :  { %1397 = vmax.xlane.f32.xlu1 %v1396_v43  ;;  %v750_v43 = vpop.f32.mrf.mxu0 }
 0x79f   :  { %v1389_v23 = vpop.xlane.xlu1 %1388 }
 0x7a0   :  { %v1399_v59 = vsub.f32 %v1373_v15, %v1389_v23 }
 0x7a2   :  { %v1403_v26 = vmul.f32 1.442695, %v1399_v59 }
 0x7a3   :  { %v1392_v60 = vpop.xlane.xlu0 %1391  ;;  %v1395_v14 = vpop.xlane.xlu1 %1394 }
 0x7a4   :  { %v1401_v58 = vsub.f32 %v1381_v18, %v1395_v14  ;;  %v1400_v24 = vsub.f32 %v1376_v20, %v1392_v60 }
 0x7a6   :  { %v1407_v25 = vmul.f32 1.442695, %v1401_v58  ;;  %v1405_v30 = vmul.f32 1.442695, %v1400_v24 }
 0x7a7   :  { %v1398_v27 = vpop.xlane.xlu1 %1397 }
 0x7a8   :  { %v1402_v28 = vsub.f32 %v1384_v21, %v1398_v27  ;;  %3286 = vpow2.f32 %v1407_v25  ;;  %v3244_v27 = vld [vmem:[%s4133_s4 + $0x10] sm:$0xff]  }
 0x7a9   :  { %3288 = vpow2.f32 %v1403_v26 }
 0x7aa   :  { %v1409_v32 = vmul.f32 1.442695, %v1402_v28 }
 0x7ac   :  { %3290 = vpow2.f32 %v1409_v32 }
 0x7ad   :  { %3292 = vpow2.f32 %v1405_v30 }
 0x7b5   :  { %v3763_v36 = vpop.eup %3286 }
 0x7b6   :  { %v1417_v63 = vsel %vm910_vm1, %v3763_v36, 0.0  ;;  %v3289_v3 = vpop.eup %3288 }
 0x7b7   :  { %1418 = vadd.xlane.f32.xlu1 %v1417_v63  ;;  %v1411_v35 = vsel %vm910_vm1, %v3289_v3, 0.0 }
 0x7b9   :  { %v3291_v34 = vpop.eup %3290 }
 0x7ba   :  { %v1420_v37 = vsel %vm910_vm1, %v3291_v34, 0.0  ;;  %v3293_v61 = vpop.eup %3292 }
 0x7bb   :  { %1421 = vadd.xlane.f32.xlu0 %v1420_v37  ;;  %1412 = vadd.xlane.f32.xlu1 %v1411_v35  ;;  %v1414_v31 = vsel %vm910_vm1, %v3293_v61, 0.0 }
 0x7bf   :  { %1415 = vadd.xlane.f32.xlu0 %v1414_v31 }
 0x7cc   :  { %319 = vperm.xlu1 %3213, %v125_v10  }
 0x7d0   :  { %169 = vperm.xlu1 %3213, %v95_v40  }
 0x7d4   :  { %174 = vperm.xlu1 %3213, %v96_v54  }
 0x7d5   :  { %324 = vperm.xlu0 %3212, %v126_v55  }
 0x7d8   :  { %254 = vperm.xlu1 %3213, %v112_v53  }
 0x7d9   :  { %249 = vperm.xlu0 %3212, %v111_v12  }
 0x840   :  { %v1419_v15 = vpop.xlane.xlu1 %1418 }
 0x844   :  { %v1422_v18 = vpop.xlane.xlu0 %1421  ;;  %v1413_v16 = vpop.xlane.xlu1 %1412 }
 0x845   :  { %3294 = vrcp.f32 %v1422_v18 }
 0x846   :  { %3296 = vrcp.f32 %v1413_v16 }
 0x847   :  { %3298 = vrcp.f32 %v1419_v15 }
 0x848   :  { %v1416_v20 = vpop.xlane.xlu0 %1415  ;;  %v320_v21 = vpop.permute.xlu1 %319 }
 0x849   :  { %3300 = vrcp.f32 %v1416_v20  ;;  %v748_v59 = vadd.f32 %v747_v19, %v320_v21 }
 0x84c   :  { %v170_v41 = vpop.permute.xlu1 %169 }
 0x84d   :  { %v628_v58 = vadd.f32 %v3538_v38, %v170_v41 }
 0x850   :  { %v325_v23 = vpop.permute.xlu0 %324  ;;  %v175_v14 = vpop.permute.xlu1 %174 }
 0x851   :  { %v751_v60 = vadd.f32 %v750_v43, %v325_v23  ;;  %v631_v24 = vadd.f32 %v3545_v42, %v175_v14 }
 0x852   :  { %v3295_v25 = vpop.eup %3294 }
 0x853   :  { %v812_v26 = vpack.c.bf16 %v751_v60, %v748_v59  ;;  %v3297_v28 = vpop.eup %3296  ;;  %v797_v30 = vpack.c.bf16 %v631_v24, %v628_v58  ;;  %v1430_v10 = vmul.f32 %v3295_v25, %v3291_v34 }
 0x854   :  { %v3299_v32 = vpop.eup %3298  ;;  %v250_v35 = vpop.permute.xlu0 %249  ;;  %v1427_v38 = vmul.f32 %v3297_v28, %v3289_v3 }
 0x855   :  { %3202 = vmatprep.subr.msk.bf16.mxu1 %vm910_vm1, %v812_v26  ;;  %v1440_v63 = vsel %vm910_vm1, %v812_v26, 0  ;;  %v255_v31 = vpop.permute.xlu1 %254  ;;  %1558 = vxpose.xlu0.c.b16.start.end [1/1] (short) (narrow) %v797_v30, 32  ;;  %v692_v40 = vadd.f32 %v3632_v62, %v250_v35  ;;  %v1429_v53 = vmul.f32 %v3299_v32, %v3763_v36 }
 0x856   :  { %v3301_v37 = vpop.eup %3300  ;;  %3099 = vmatpush3.bf16.xpose.msra.mxu1 %v1440_v63  ;;  %v695_v54 = vadd.f32 %v3636_v2, %v255_v31 }
 0x857   :  { %v1428_v42 = vmul.f32 %v3301_v37, %v3293_v61  ;;  %3104 = vmatprep.subr.bf16.mxu1 %v3244_v27  ;;  %v1432_v12 = vpack.c.bf16 %v1430_v10, %v1429_v53 }
 0x858   :  { %v805_v15 = vpack.c.bf16 %v695_v54, %v692_v40 }
 0x859   :  { %v1431_v55 = vpack.c.bf16 %v1428_v42, %v1427_v38 }
 0x85b   :  { %3100 = vmatprep.mubr.msk.bf16.mxu1 %vm910_vm1, %v1431_v55 }
 0x85d   :  { %3101 = vmatmul.mubr.msk.bf16.vlgmr.msra.gmra.mxu1 %vm910_vm1, %v1432_v12 }
 0x85e   :  { %3105 = vmatpush3.bf16.msra.mxu1 %v3244_v27 }
 0x85f   :  { %3110 = vmatprep.subr.bf16.mxu1 %v805_v15 }
 0x8b7   :  { %v1566_v62 = vpop.trf.xlu0 }
 0x8bb   :  { %v1567_v2 = vpop.trf.xlu0 }
 0x91d   :  { %v3102_v18 = vpop.f32.mrf.mxu1 }
 0x91f   :  { %v1476_v3 = vpop.f32.mrf.mxu1 }
 0x921   :  { %v3103_v61 = vpop.f32.mrf.mxu1 }
 0x922   :  { %v1492_v19 = vpack.c.bf16 %v3103_v61, %v3102_v18 }
 0x923   :  { %v1479_v34 = vpop.f32.mrf.mxu1 }
 0x924   :  { %v1491_v16 = vpack.c.bf16 %v1479_v34, %v1476_v3 }
 0x926   :  { %3106 = vmatprep.mubr.msk.bf16.mxu1 %vm854_vm0, %v1491_v16 }
 0x927   :  { %3107 = vmatmul.mubr.msk.bf16.vlgmr.msra.gmra.mxu1 %vm854_vm0, %v1492_v19 }
 0x928   :  { %3111 = vmatpush3.bf16.msra.mxu1 %v805_v15  ;;  %3112 = vmatprep.mubr.msk.bf16.mxu1 %vm854_vm0, %v1566_v62  ;;  %v127_v62 = vld [vmem:[%s4132_s3 + $0x130] sm:$0xff] }
 0x92f   :  { %3113 = vmatmul.mubr.msk.bf16.vlgmr.msra.gmra.mxu1 %vm854_vm0, %v1567_v2  ;;  %v97_v2 = vld [vmem:[%s4132_s3 + $0x40] sm:$0xff] }
 0x9e7   :  { %v3108_v36 = vpop.f32.mrf.mxu1 }
 0x9e8   :  { %v3809_v20 = vadd.f32 %v3108_v36, %v3747_v39  ;;  %v98_v36 = vld [vmem:[%s4132_s3 + $0x48] sm:$0xff] }
 0x9e9   :  { %v1539_v21 = vpop.f32.mrf.mxu1 }
 0x9ea   :  { %v3812_v41 = vadd.f32 %v1539_v21, %v3749_v52  ;;  %v128_v21 = vld [vmem:[%s4132_s3 + $0x138] sm:$0xff] }
 0x9eb   :  { %v3109_v43 = vpop.f32.mrf.mxu1 }
 0x9ec   :  { %v3815_v23 = vadd.f32 %v3109_v43, %v3751_v56  ;;  %v114_v43 = vld [vmem:[%s4132_s3 + $0xc8] sm:$0xff] }
 0x9ed   :  { %v1542_v59 = vpop.f32.mrf.mxu1 }
 0x9ee   :  { %v3818_v60 = vadd.f32 %v1542_v59, %v3753_v57  ;;  %v113_v59 = vld [vmem:[%s4132_s3 + $0xc0] sm:$0xff] }
 0x9ef   :  { %v3114_v14 = vpop.f32.mrf.mxu1 }
 0x9f0   :  { %v1623_v39 = vadd.f32 %v3114_v14, %v3579_v1 }
 0x9f1   :  { %v1614_v58 = vpop.f32.mrf.mxu1 }
 0x9f2   :  { %v1615_v24 = vadd.f32 %v1614_v58, %v3574_v0  ;;  %v1635_v57 = vsel %vm910_vm1, %v1623_v39, -inf }
 0x9f3   :  { %v3115_v25 = vpop.f32.mrf.mxu1 }
 0x9f4   :  { %v1629_v26 = vsel %vm910_vm1, %v1615_v24, -inf  ;;  %v1626_v56 = vadd.f32 %v3115_v25, %v3592_v8 }
 0x9f5   :  { %v1617_v27 = vpop.f32.mrf.mxu1  ;;  %1630 = vmax.xlane.f32.xlu1 %v1629_v26 }
 0x9f6   :  { %v1618_v52 = vadd.f32 %v1617_v27, %v3585_v5  ;;  %v1638_v30 = vsel %vm910_vm1, %v1626_v56, -inf }
 0x9f8   :  { %v1632_v28 = vsel %vm910_vm1, %v1618_v52, -inf }
 0x9f9   :  { %1633 = vmax.xlane.f32.xlu0 %v1632_v28  ;;  %1636 = vmax.xlane.f32.xlu1 %v1635_v57 }
 0x9fd   :  { %1639 = vmax.xlane.f32.xlu1 %v1638_v30 }
 0xa7e   :  { %v1631_v32 = vpop.xlane.xlu1 %1630 }
 0xa7f   :  { %v1641_v63 = vsub.f32 %v1615_v24, %v1631_v32 }
 0xa81   :  { %v1645_v10 = vmul.f32 1.442695, %v1641_v63 }
 0xa82   :  { %v1634_v37 = vpop.xlane.xlu0 %1633  ;;  %v1637_v35 = vpop.xlane.xlu1 %1636 }
 0xa83   :  { %v1643_v31 = vsub.f32 %v1623_v39, %v1637_v35  ;;  %v1642_v38 = vsub.f32 %v1618_v52, %v1634_v37  ;;  %v3245_v37 = vld [vmem:[%s4133_s4 + $0x18] sm:$0xff]  }
 0xa85   :  { %v1649_v42 = vmul.f32 1.442695, %v1643_v31  ;;  %v1647_v55 = vmul.f32 1.442695, %v1642_v38 }
 0xa86   :  { %v1640_v40 = vpop.xlane.xlu1 %1639 }
 0xa87   :  { %v1644_v54 = vsub.f32 %v1626_v56, %v1640_v40  ;;  %3302 = vpow2.f32 %v1649_v42 }
 0xa88   :  { %3304 = vpow2.f32 %v1645_v10 }
 0xa89   :  { %v1651_v53 = vmul.f32 1.442695, %v1644_v54 }
 0xa8b   :  { %3306 = vpow2.f32 %v1651_v53 }
 0xa8c   :  { %3308 = vpow2.f32 %v1647_v55 }
 0xa94   :  { %v3303_v12 = vpop.eup %3302 }
 0xa95   :  { %v1659_v15 = vsel %vm910_vm1, %v3303_v12, 0.0  ;;  %v3305_v18 = vpop.eup %3304 }
 0xa96   :  { %1660 = vadd.xlane.f32.xlu1 %v1659_v15  ;;  %v1653_v16 = vsel %vm910_vm1, %v3305_v18, 0.0 }
 0xa98   :  { %v3307_v3 = vpop.eup %3306 }
 0xa99   :  { %v1662_v61 = vsel %vm910_vm1, %v3307_v3, 0.0  ;;  %v3309_v34 = vpop.eup %3308 }
 0xa9a   :  { %1663 = vadd.xlane.f32.xlu0 %v1662_v61  ;;  %1654 = vadd.xlane.f32.xlu1 %v1653_v16  ;;  %v1656_v19 = vsel %vm910_vm1, %v3309_v34, 0.0 }
 0xa9e   :  { %1657 = vadd.xlane.f32.xlu0 %v1656_v19 }
 0xaab   :  { %329 = vperm.xlu1 %3213, %v127_v62  }
 0xaaf   :  { %179 = vperm.xlu1 %3213, %v97_v2  }
 0xab3   :  { %184 = vperm.xlu1 %3213, %v98_v36  }
 0xab4   :  { %334 = vperm.xlu0 %3212, %v128_v21  }
 0xab7   :  { %264 = vperm.xlu1 %3213, %v114_v43  }
 0xab8   :  { %259 = vperm.xlu0 %3212, %v113_v59  }
 0xb1f   :  { %v1661_v14 = vpop.xlane.xlu1 %1660 }
 0xb23   :  { %v1664_v58 = vpop.xlane.xlu0 %1663  ;;  %v1655_v24 = vpop.xlane.xlu1 %1654 }
 0xb24   :  { %3310 = vrcp.f32 %v1664_v58 }
 0xb25   :  { %3312 = vrcp.f32 %v1655_v24 }
 0xb26   :  { %3314 = vrcp.f32 %v1661_v14 }
 0xb27   :  { %v1658_v25 = vpop.xlane.xlu0 %1657  ;;  %v330_v39 = vpop.permute.xlu1 %329 }
 0xb28   :  { %3316 = vrcp.f32 %v1658_v25  ;;  %v756_v52 = vadd.f32 %v3788_v17, %v330_v39 }
 0xb2b   :  { %v180_v26 = vpop.permute.xlu1 %179 }
 0xb2c   :  { %v636_v57 = vadd.f32 %v3551_v45, %v180_v26 }
 0xb2f   :  { %v335_v27 = vpop.permute.xlu0 %334  ;;  %v185_v28 = vpop.permute.xlu1 %184 }
 0xb30   :  { %v759_v56 = vadd.f32 %v3790_v22, %v335_v27  ;;  %v639_v30 = vadd.f32 %v3555_v47, %v185_v28 }
 0xb31   :  { %v3311_v32 = vpop.eup %3310 }
 0xb32   :  { %v813_v63 = vpack.c.bf16 %v759_v56, %v756_v52  ;;  %v3313_v35 = vpop.eup %3312  ;;  %v798_v31 = vpack.c.bf16 %v639_v30, %v636_v57  ;;  %v1672_v40 = vmul.f32 %v3311_v32, %v3307_v3 }
 0xb33   :  { %v3315_v38 = vpop.eup %3314  ;;  %v260_v22 = vpop.permute.xlu0 %259  ;;  %v1669_v45 = vmul.f32 %v3313_v35, %v3305_v18 }
 0xb34   :  { %3203 = vmatprep.subr.msk.bf16.mxu1 %vm910_vm1, %v813_v63  ;;  %v1682_v17 = vsel %vm910_vm1, %v813_v63, 0  ;;  %v265_v10 = vpop.permute.xlu1 %264  ;;  %1800 = vxpose.xlu0.c.b16.start.end [1/1] (short) (narrow) %v798_v31, 32  ;;  %v700_v54 = vadd.f32 %v3642_v6, %v260_v22  ;;  %v1671_v15 = vmul.f32 %v3315_v38, %v3303_v12  ;;  %v3247_v12 = vld [vmem:[%s4131_s2 + $0xa8] sm:$0xff]  }
 0xb35   :  { %v3317_v42 = vpop.eup %3316  ;;  %3117 = vmatpush3.bf16.xpose.msra.mxu1 %v1682_v17  ;;  %v703_v55 = vadd.f32 %v3646_v9, %v265_v10  ;;  %v3246_v9 = vld [vmem:[%s4131_s2 + $0xa0] sm:$0xff]  }
 0xb36   :  { %v1670_v47 = vmul.f32 %v3317_v42, %v3309_v34  ;;  %3122 = vmatprep.subr.bf16.mxu1 %v3245_v37  ;;  %v1674_v61 = vpack.c.bf16 %v1672_v40, %v1671_v15  ;;  %3048 = vmatprep.mubr.bf16.mxu0 %v3246_v9 }
 0xb37   :  { %v806_v16 = vpack.c.bf16 %v703_v55, %v700_v54  ;;  %3049 = vmatmul.mubr.bf16.gmra.mxu0 %v3247_v12 }
 0xb38   :  { %v1673_v53 = vpack.c.bf16 %v1670_v47, %v1669_v45 }
 0xb3a   :  { %3118 = vmatprep.mubr.msk.bf16.mxu1 %vm910_vm1, %v1673_v53 }
 0xb3c   :  { %3119 = vmatmul.mubr.msk.bf16.vlgmr.msra.gmra.mxu1 %vm910_vm1, %v1674_v61  ;;  %v129_v61 = vld [vmem:[%s4132_s3 + $0x140] sm:$0xff] }
 0xb3d   :  { %3123 = vmatpush3.bf16.msra.mxu1 %v3245_v37 }
 0xb3e   :  { %3128 = vmatprep.subr.bf16.mxu1 %v806_v16 }
 0xb96   :  { %v1808_v36 = vpop.trf.xlu0 }
 0xb9a   :  { %v1809_v6 = vpop.trf.xlu0 }
 0xbfc   :  { %v3120_v19 = vpop.f32.mrf.mxu1 }
 0xbfe   :  { %v1718_v62 = vpop.f32.mrf.mxu1 }
 0xc00   :  { %v3121_v18 = vpop.f32.mrf.mxu1 }
 0xc01   :  { %v1734_v2 = vpack.c.bf16 %v3121_v18, %v3120_v19  ;;  %v100_v19 = vld [vmem:[%s4132_s3 + $0x58] sm:$0xff] }
 0xc02   :  { %v1721_v34 = vpop.f32.mrf.mxu1  ;;  %v116_v18 = vld [vmem:[%s4132_s3 + $0xd8] sm:$0xff] }
 0xc03   :  { %v1733_v3 = vpack.c.bf16 %v1721_v34, %v1718_v62  ;;  %v130_v62 = vld [vmem:[%s4132_s3 + $0x148] sm:$0xff]  ;;  %v115_v34 = vld [vmem:[%s4132_s3 + $0xd0] sm:$0xff] }
 0xc05   :  { %3124 = vmatprep.mubr.msk.bf16.mxu1 %vm854_vm0, %v1733_v3 }
 0xc06   :  { %3125 = vmatmul.mubr.msk.bf16.vlgmr.msra.gmra.mxu1 %vm854_vm0, %v1734_v2  ;;  %v3918_v2 = vpop.f32.mrf.mxu0 }
 0xc07   :  { %3129 = vmatpush3.bf16.msra.mxu1 %v806_v16  ;;  %3130 = vmatprep.mubr.msk.bf16.mxu1 %vm854_vm0, %v1808_v36  ;;  %v99_v16 = vld [vmem:[%s4132_s3 + $0x50] sm:$0xff] }
 0xc08   :  { %v763_v9 = vpop.f32.mrf.mxu0 }
 0xc0e   :  { %3131 = vmatmul.mubr.msk.bf16.vlgmr.msra.gmra.mxu1 %vm854_vm0, %v1809_v6 }
 0xcc6   :  { %v3126_v21 = vpop.f32.mrf.mxu1 }
 0xcc7   :  { %v3874_v43 = vadd.f32 %v3126_v21, %v3809_v20 }
 0xcc8   :  { %v1781_v59 = vpop.f32.mrf.mxu1 }
 0xcc9   :  { %v3877_v14 = vadd.f32 %v1781_v59, %v3812_v41  ;;  %v3920_v59 = vpop.f32.mrf.mxu0 }
 0xcca   :  { %v3127_v58 = vpop.f32.mrf.mxu1 }
 0xccb   :  { %v3880_v24 = vadd.f32 %v3127_v58, %v3815_v23 }
 0xccc   :  { %v1784_v25 = vpop.f32.mrf.mxu1 }
 0xccd   :  { %v3883_v39 = vadd.f32 %v1784_v25, %v3818_v60  ;;  %v766_v25 = vpop.f32.mrf.mxu0 }
 0xcce   :  { %v3132_v26 = vpop.f32.mrf.mxu1 }
 0xccf   :  { %v1865_v20 = vadd.f32 %v3132_v26, %v3579_v1 }
 0xcd0   :  { %v1856_v27 = vpop.f32.mrf.mxu1 }
 0xcd1   :  { %v1857_v52 = vadd.f32 %v1856_v27, %v3574_v0  ;;  %v1877_v60 = vsel %vm910_vm1, %v1865_v20, -inf }
 0xcd2   :  { %v3133_v56 = vpop.f32.mrf.mxu1 }
 0xcd3   :  { %v1871_v28 = vsel %vm910_vm1, %v1857_v52, -inf  ;;  %v1868_v23 = vadd.f32 %v3133_v56, %v3592_v8 }
 0xcd4   :  { %v1859_v57 = vpop.f32.mrf.mxu1  ;;  %1872 = vmax.xlane.f32.xlu1 %v1871_v28 }
 0xcd5   :  { %v1860_v41 = vadd.f32 %v1859_v57, %v3585_v5  ;;  %v1880_v32 = vsel %vm910_vm1, %v1868_v23, -inf }
 0xcd7   :  { %v1874_v30 = vsel %vm910_vm1, %v1860_v41, -inf }
 0xcd8   :  { %1875 = vmax.xlane.f32.xlu0 %v1874_v30  ;;  %1878 = vmax.xlane.f32.xlu1 %v1877_v60 }
 0xcdc   :  { %1881 = vmax.xlane.f32.xlu1 %v1880_v32 }
 0xd5d   :  { %v1873_v0 = vpop.xlane.xlu1 %1872 }
 0xd5e   :  { %v1883_v63 = vsub.f32 %v1857_v52, %v1873_v0 }
 0xd60   :  { %v1887_v17 = vmul.f32 1.442695, %v1883_v63 }
 0xd61   :  { %v1876_v1 = vpop.xlane.xlu0 %1875  ;;  %v1879_v37 = vpop.xlane.xlu1 %1878 }
 0xd62   :  { %v1885_v35 = vsub.f32 %v1865_v20, %v1879_v37  ;;  %v1884_v31 = vsub.f32 %v1860_v41, %v1876_v1 }
 0xd64   :  { %v1891_v38 = vmul.f32 1.442695, %v1885_v35  ;;  %v1889_v8 = vmul.f32 1.442695, %v1884_v31 }
 0xd65   :  { %v1882_v5 = vpop.xlane.xlu1 %1881 }
 0xd66   :  { %v1886_v42 = vsub.f32 %v1868_v23, %v1882_v5  ;;  %3318 = vpow2.f32 %v1891_v38  ;;  %v3248_v23 = vld [vmem:[%s4133_s4 + $0x20] sm:$0xff]  }
 0xd67   :  { %3320 = vpow2.f32 %v1887_v17 }
 0xd68   :  { %v1893_v22 = vmul.f32 1.442695, %v1886_v42 }
 0xd6a   :  { %3322 = vpow2.f32 %v1893_v22 }
 0xd6b   :  { %3324 = vpow2.f32 %v1889_v8 }
 0xd73   :  { %v3893_v10 = vpop.eup %3318 }
 0xd74   :  { %v1901_v45 = vsel %vm910_vm1, %v3893_v10, 0.0  ;;  %v3321_v47 = vpop.eup %3320 }
 0xd75   :  { %1902 = vadd.xlane.f32.xlu1 %v1901_v45  ;;  %v1895_v53 = vsel %vm910_vm1, %v3321_v47, 0.0 }
 0xd77   :  { %v3323_v40 = vpop.eup %3322 }
 0xd78   :  { %v1904_v54 = vsel %vm910_vm1, %v3323_v40, 0.0  ;;  %v3325_v55 = vpop.eup %3324 }
 0xd79   :  { %1905 = vadd.xlane.f32.xlu0 %v1904_v54  ;;  %1896 = vadd.xlane.f32.xlu1 %v1895_v53  ;;  %v1898_v15 = vsel %vm910_vm1, %v3325_v55, 0.0 }
 0xd7d   :  { %1899 = vadd.xlane.f32.xlu0 %v1898_v15 }
 0xd8a   :  { %339 = vperm.xlu1 %3213, %v129_v61  }
 0xd8e   :  { %189 = vperm.xlu1 %3213, %v99_v16  }
 0xd92   :  { %194 = vperm.xlu1 %3213, %v100_v19  }
 0xd93   :  { %344 = vperm.xlu0 %3212, %v130_v62  }
 0xd96   :  { %274 = vperm.xlu1 %3213, %v116_v18  }
 0xd97   :  { %269 = vperm.xlu0 %3212, %v115_v34  }
 0xdfe   :  { %v1903_v3 = vpop.xlane.xlu1 %1902 }
 0xe02   :  { %v1906_v36 = vpop.xlane.xlu0 %1905  ;;  %v1897_v6 = vpop.xlane.xlu1 %1896 }
 0xe03   :  { %3326 = vrcp.f32 %v1906_v36  ;;  %v3953_v36 = vld [vmem:[%s4130_s1] sm:$0xff] }
 0xe04   :  { %3328 = vrcp.f32 %v1897_v6 }
 0xe05   :  { %3330 = vrcp.f32 %v1903_v3 }
 0xe06   :  { %v1900_v12 = vpop.xlane.xlu0 %1899  ;;  %v340_v21 = vpop.permute.xlu1 %339 }
 0xe07   :  { %3332 = vrcp.f32 %v1900_v12  ;;  %v764_v27 = vadd.f32 %v763_v9, %v340_v21  ;;  %v3966_v12 = vld [vmem:[%s4130_s1 + $0x8] sm:$0xff] }
 0xe0a   :  { %v190_v58 = vpop.permute.xlu1 %189 }
 0xe0b   :  { %v644_v20 = vadd.f32 %v3549_v44, %v190_v58  ;;  %v3972_v58 = vld [vmem:[%s4130_s1 + $0x18] sm:$0xff] }
 0xe0e   :  { %v345_v26 = vpop.permute.xlu0 %344  ;;  %v195_v56 = vpop.permute.xlu1 %194 }
 0xe0f   :  { %v767_v52 = vadd.f32 %v766_v25, %v345_v26  ;;  %v647_v28 = vadd.f32 %v3553_v46, %v195_v56  ;;  %v101_v56 = vld [vmem:[%s4132_s3 + $0x60] sm:$0xff] }
 0xe10   :  { %v3327_v57 = vpop.eup %3326 }
 0xe11   :  { %v814_v41 = vpack.c.bf16 %v767_v52, %v764_v27  ;;  %v3329_v30 = vpop.eup %3328  ;;  %v799_v60 = vpack.c.bf16 %v647_v28, %v644_v20  ;;  %v1914_v35 = vmul.f32 %v3327_v57, %v3323_v40  ;;  %v102_v20 = vld [vmem:[%s4132_s3 + $0x68] sm:$0xff]  ;;  %v131_v28 = vld [vmem:[%s4132_s3 + $0x150] sm:$0xff] }
 0xe12   :  { %v3331_v32 = vpop.eup %3330  ;;  %v270_v1 = vpop.permute.xlu0 %269  ;;  %v1911_v44 = vmul.f32 %v3329_v30, %v3321_v47 }
 0xe13   :  { %3204 = vmatprep.subr.msk.bf16.mxu1 %vm910_vm1, %v814_v41  ;;  %v1924_v0 = vsel %vm910_vm1, %v814_v41, 0  ;;  %v275_v37 = vpop.permute.xlu1 %274  ;;  %2042 = vxpose.xlu0.c.b16.start.end [1/1] (short) (narrow) %v799_v60, 32  ;;  %v708_v31 = vadd.f32 %v3640_v4, %v270_v1  ;;  %v1913_v5 = vmul.f32 %v3331_v32, %v3893_v10 }
 0xe14   :  { %v3333_v63 = vpop.eup %3332  ;;  %3135 = vmatpush3.bf16.xpose.msra.mxu1 %v1924_v0  ;;  %v711_v38 = vadd.f32 %v3644_v7, %v275_v37 }
 0xe15   :  { %v1912_v46 = vmul.f32 %v3333_v63, %v3325_v55  ;;  %3140 = vmatprep.subr.bf16.mxu1 %v3248_v23  ;;  %v1916_v42 = vpack.c.bf16 %v1914_v35, %v1913_v5 }
 0xe16   :  { %v807_v8 = vpack.c.bf16 %v711_v38, %v708_v31 }
 0xe17   :  { %v1915_v17 = vpack.c.bf16 %v1912_v46, %v1911_v44 }
 0xe19   :  { %3136 = vmatprep.mubr.msk.bf16.mxu1 %vm910_vm1, %v1915_v17 }
 0xe1b   :  { %3137 = vmatmul.mubr.msk.bf16.vlgmr.msra.gmra.mxu1 %vm910_vm1, %v1916_v42 }
 0xe1c   :  { %3141 = vmatpush3.bf16.msra.mxu1 %v3248_v23 }
 0xe1d   :  { %3146 = vmatprep.subr.bf16.mxu1 %v807_v8 }
 0xe75   :  { %v2050_v4 = vpop.trf.xlu0 }
 0xe79   :  { %v2051_v7 = vpop.trf.xlu0 }
 0xedb   :  { %v3138_v22 = vpop.f32.mrf.mxu1 }
 0xedd   :  { %v1960_v45 = vpop.f32.mrf.mxu1 }
 0xedf   :  { %v3139_v47 = vpop.f32.mrf.mxu1 }
 0xee0   :  { %v1976_v55 = vpack.c.bf16 %v3139_v47, %v3138_v22  ;;  %v3249_v47 = vld [vmem:[%s4131_s2 + $0xb0] sm:$0xff]  }
 0xee1   :  { %v1963_v40 = vpop.f32.mrf.mxu1  ;;  %3052 = vmatprep.mubr.bf16.mxu0 %v3249_v47 }
 0xee2   :  { %v1975_v54 = vpack.c.bf16 %v1963_v40, %v1960_v45  ;;  %v117_v45 = vld [vmem:[%s4132_s3 + $0xe0] sm:$0xff]  ;;  %v118_v40 = vld [vmem:[%s4132_s3 + $0xe8] sm:$0xff] }
 0xee4   :  { %3142 = vmatprep.mubr.msk.bf16.mxu1 %vm854_vm0, %v1975_v54  ;;  %v3250_v54 = vld [vmem:[%s4131_s2 + $0xb8] sm:$0xff]  }
 0xee5   :  { %3143 = vmatmul.mubr.msk.bf16.vlgmr.msra.gmra.mxu1 %vm854_vm0, %v1976_v55  ;;  %3053 = vmatmul.mubr.bf16.gmra.mxu0 %v3250_v54  ;;  %v132_v55 = vld [vmem:[%s4132_s3 + $0x158] sm:$0xff] }
 0xee6   :  { %3147 = vmatpush3.bf16.msra.mxu1 %v807_v8  ;;  %3148 = vmatprep.mubr.msk.bf16.mxu1 %vm854_vm0, %v2050_v4 }
 0xeed   :  { %3149 = vmatmul.mubr.msk.bf16.vlgmr.msra.gmra.mxu1 %vm854_vm0, %v2051_v7 }
 0xfa5   :  { %v3144_v10 = vpop.f32.mrf.mxu1 }
 0xfa6   :  { %v3939_v53 = vadd.f32 %v3144_v10, %v3874_v43 }
 0xfa7   :  { %v2023_v15 = vpop.f32.mrf.mxu1 }
 0xfa8   :  { %v3942_v61 = vadd.f32 %v2023_v15, %v3877_v14  ;;  %v3959_v14 = vld [vmem:[%s4130_s1 + $0x10] sm:$0xff] }
 0xfa9   :  { %v3145_v16 = vpop.f32.mrf.mxu1 }
 0xfaa   :  { %v3945_v19 = vadd.f32 %v3145_v16, %v3880_v24 }
 0xfab   :  { %v2026_v62 = vpop.f32.mrf.mxu1 }
 0xfac   :  { %v3948_v18 = vadd.f32 %v2026_v62, %v3883_v39 }
 0xfad   :  { %v3150_v34 = vpop.f32.mrf.mxu1 }
 0xfae   :  { %v2107_v24 = vadd.f32 %v3959_v14, %v3150_v34 }
 0xfaf   :  { %v2098_v3 = vpop.f32.mrf.mxu1 }
 0xfb0   :  { %v2099_v43 = vadd.f32 %v3953_v36, %v2098_v3  ;;  %v2119_v27 = vsel %vm910_vm1, %v2107_v24, -inf }
 0xfb1   :  { %v3151_v6 = vpop.f32.mrf.mxu1 }
 0xfb2   :  { %v2113_v39 = vsel %vm910_vm1, %v2099_v43, -inf  ;;  %v2110_v25 = vadd.f32 %v3972_v58, %v3151_v6 }
 0xfb3   :  { %v2101_v9 = vpop.f32.mrf.mxu1  ;;  %2114 = vmax.xlane.f32.xlu1 %v2113_v39 }
 0xfb4   :  { %v2102_v21 = vadd.f32 %v3966_v12, %v2101_v9  ;;  %v2122_v52 = vsel %vm910_vm1, %v2110_v25, -inf }
 0xfb6   :  { %v2116_v26 = vsel %vm910_vm1, %v2102_v21, -inf }
 0xfb7   :  { %2117 = vmax.xlane.f32.xlu0 %v2116_v26  ;;  %2120 = vmax.xlane.f32.xlu1 %v2119_v27 }
 0xfbb   :  { %2123 = vmax.xlane.f32.xlu1 %v2122_v52 }
 0xfcc   :  { %199 = vperm.xlu1 %3213, %v101_v56  }
 0xfcd   :  { %204 = vperm.xlu0 %3212, %v102_v20  }
 0xfd0   :  { %349 = vperm.xlu1 %3213, %v131_v28  }
0x103c   :  { %v2115_v57 = vpop.xlane.xlu1 %2114 }
0x103d   :  { %v2125_v41 = vsub.f32 %v2099_v43, %v2115_v57 }
0x103f   :  { %v2129_v63 = vmul.f32 1.442695, %v2125_v41 }
0x1040   :  { %v2118_v23 = vpop.xlane.xlu0 %2117  ;;  %v2121_v30 = vpop.xlane.xlu1 %2120 }
0x1041   :  { %v2127_v60 = vsub.f32 %v2107_v24, %v2121_v30  ;;  %v2126_v32 = vsub.f32 %v2102_v21, %v2118_v23 }
0x1043   :  { %v2133_v0 = vmul.f32 1.442695, %v2127_v60  ;;  %v2131_v44 = vmul.f32 1.442695, %v2126_v32  ;;  %v3251_v32 = vld [vmem:[%s4133_s4 + $0x28] sm:$0xff]  }
0x1044   :  { %v2124_v1 = vpop.xlane.xlu1 %2123  ;;  %3158 = vmatprep.subr.bf16.mxu1 %v3251_v32 }
0x1045   :  { %v2128_v37 = vsub.f32 %v2110_v25, %v2124_v1  ;;  %3334 = vpow2.f32 %v2133_v0  ;;  %3159 = vmatpush3.bf16.msra.mxu1 %v3251_v32  ;;  %v4021_v0 = vpop.f32.mrf.mxu0 }
0x1046   :  { %3336 = vpow2.f32 %v2129_v63 }
0x1047   :  { %v2135_v46 = vmul.f32 1.442695, %v2128_v37  ;;  %v4023_v63 = vpop.f32.mrf.mxu0 }
0x1048   :  { %v205_v4 = vpop.permute.xlu0 %204  ;;  %v200_v7 = vpop.permute.xlu1 %199 }
0x1049   :  { %3338 = vpow2.f32 %v2135_v46  ;;  %v655_v10 = vadd.f32 %v3563_v51, %v205_v4  ;;  %v652_v15 = vadd.f32 %v3559_v49, %v200_v7  ;;  %v4025_v1 = vpop.f32.mrf.mxu0 }
0x104a   :  { %3340 = vpow2.f32 %v2131_v44 }
0x104b   :  { %v800_v16 = vpack.c.bf16 %v655_v10, %v652_v15  ;;  %v4027_v37 = vpop.f32.mrf.mxu0  ;;  %v103_v15 = vld [vmem:[%s4132_s3 + $0x70] sm:$0xff] }
0x104c   :  { %v350_v62 = vpop.permute.xlu1 %349 }
0x104d   :  { %v772_v21 = vadd.f32 %v3918_v2, %v350_v62  ;;  %v133_v62 = vld [vmem:[%s4132_s3 + $0x160] sm:$0xff] }
0x1052   :  { %v3335_v35 = vpop.eup %3334 }
0x1053   :  { %v2143_v31 = vsel %vm910_vm1, %v3335_v35, 0.0  ;;  %v3337_v38 = vpop.eup %3336 }
0x1054   :  { %2144 = vadd.xlane.f32.xlu1 %v2143_v31  ;;  %v2137_v8 = vsel %vm910_vm1, %v3337_v38, 0.0 }
0x1056   :  { %v3339_v17 = vpop.eup %3338 }
0x1057   :  { %v2146_v5 = vsel %vm910_vm1, %v3339_v17, 0.0  ;;  %v3341_v42 = vpop.eup %3340 }
0x1058   :  { %2147 = vadd.xlane.f32.xlu0 %v2146_v5  ;;  %2138 = vadd.xlane.f32.xlu1 %v2137_v8  ;;  %v2140_v22 = vsel %vm910_vm1, %v3341_v42, 0.0 }
0x105c   :  { %2141 = vadd.xlane.f32.xlu0 %v2140_v22 }
0x1069   :  { %279 = vperm.xlu1 %3213, %v117_v45  }
0x106d   :  { %284 = vperm.xlu1 %3213, %v118_v40  }
0x1072   :  { %354 = vperm.xlu0 %3212, %v132_v55  }
0x1090   :  { %2284 = vxpose.xlu0.c.b16.start.end [1/1] (short) (narrow) %v800_v16, 32  ;;  %v104_v16 = vld [vmem:[%s4132_s3 + $0x78] sm:$0xff] }
0x10dd   :  { %v2145_v34 = vpop.xlane.xlu1 %2144 }
0x10e1   :  { %v2148_v3 = vpop.xlane.xlu0 %2147  ;;  %v2139_v43 = vpop.xlane.xlu1 %2138 }
0x10e2   :  { %3342 = vrcp.f32 %v2148_v3 }
0x10e3   :  { %3344 = vrcp.f32 %v2139_v43 }
0x10e4   :  { %3346 = vrcp.f32 %v2145_v34 }
0x10e5   :  { %v2142_v6 = vpop.xlane.xlu0 %2141  ;;  %v280_v24 = vpop.permute.xlu1 %279 }
0x10e6   :  { %3348 = vrcp.f32 %v2142_v6  ;;  %v716_v26 = vadd.f32 %v3650_v29, %v280_v24 }
0x10e9   :  { %v285_v39 = vpop.permute.xlu1 %284 }
0x10ea   :  { %v719_v51 = vadd.f32 %v3654_v13, %v285_v39 }
0x10ec   :  { %v808_v20 = vpack.c.bf16 %v719_v51, %v716_v26 }
0x10ed   :  { %v355_v9 = vpop.permute.xlu0 %354 }
0x10ee   :  { %v775_v49 = vadd.f32 %v3920_v59, %v355_v9 }
0x10ef   :  { %v3343_v25 = vpop.eup %3342 }
0x10f0   :  { %v815_v27 = vpack.c.bf16 %v775_v49, %v772_v21  ;;  %v3345_v52 = vpop.eup %3344  ;;  %v2156_v41 = vmul.f32 %v3343_v25, %v3339_v17 }
0x10f1   :  { %v3347_v56 = vpop.eup %3346  ;;  %v2153_v2 = vmul.f32 %v3345_v52, %v3337_v38 }
0x10f2   :  { %3205 = vmatprep.subr.msk.bf16.mxu0 %vm910_vm1, %v815_v27  ;;  %v2166_v28 = vsel %vm910_vm1, %v815_v27, 0  ;;  %v2155_v13 = vmul.f32 %v3347_v56, %v3335_v35  ;;  %v2292_v29 = vpop.trf.xlu0 }
0x10f3   :  { %v3349_v57 = vpop.eup %3348  ;;  %3153 = vmatpush3.bf16.xpose.msra.mxu0 %v2166_v28 }
0x10f4   :  { %3164 = vmatprep.subr.bf16.mxu0 %v808_v20  ;;  %v2154_v23 = vmul.f32 %v3349_v57, %v3341_v42  ;;  %v2158_v59 = vpack.c.bf16 %v2156_v41, %v2155_v13  ;;  %v120_v13 = vld [vmem:[%s4132_s3 + $0xf8] sm:$0xff] }
0x10f6   :  { %v2157_v30 = vpack.c.bf16 %v2154_v23, %v2153_v2  ;;  %v2293_v60 = vpop.trf.xlu0  ;;  %v119_v23 = vld [vmem:[%s4132_s3 + $0xf0] sm:$0xff] }
0x10f8   :  { %3154 = vmatprep.mubr.msk.bf16.mxu0 %vm910_vm1, %v2157_v30 }
0x10fa   :  { %3155 = vmatmul.mubr.msk.bf16.vlgmr.msra.gmra.mxu0 %vm910_vm1, %v2158_v59  ;;  %v134_v59 = vld [vmem:[%s4132_s3 + $0x168] sm:$0xff] }
0x10fb   :  { %3165 = vmatpush3.bf16.msra.mxu0 %v808_v20  ;;  %3166 = vmatprep.mubr.msk.bf16.mxu0 %vm854_vm0, %v2292_v29 }
0x1102   :  { %3167 = vmatmul.mubr.msk.bf16.vlgmr.msra.gmra.mxu0 %vm854_vm0, %v2293_v60 }
0x11ba   :  { %v3156_v44 = vpop.f32.mrf.mxu0 }
0x11bc   :  { %v2202_v46 = vpop.f32.mrf.mxu0 }
0x11be   :  { %v3157_v35 = vpop.f32.mrf.mxu0 }
0x11bf   :  { %v2218_v17 = vpack.c.bf16 %v3157_v35, %v3156_v44 }
0x11c0   :  { %v2205_v31 = vpop.f32.mrf.mxu0 }
0x11c1   :  { %v2217_v38 = vpack.c.bf16 %v2205_v31, %v2202_v46 }
0x11c2   :  { %v3168_v5 = vpop.f32.mrf.mxu0 }
0x11c3   :  { %3160 = vmatprep.mubr.msk.bf16.mxu1 %vm854_vm0, %v2217_v38  ;;  %v2349_v45 = vadd.f32 %v3959_v14, %v3168_v5 }
0x11c4   :  { %3161 = vmatmul.mubr.msk.bf16.vlgmr.msra.gmra.mxu1 %vm854_vm0, %v2218_v17  ;;  %v2340_v42 = vpop.f32.mrf.mxu0 }
0x11c5   :  { %v2341_v8 = vadd.f32 %v3953_v36, %v2340_v42  ;;  %v2361_v7 = vsel %vm910_vm1, %v2349_v45, -inf }
0x11c6   :  { %v3169_v22 = vpop.f32.mrf.mxu0 }
0x11c7   :  { %v2355_v47 = vsel %vm910_vm1, %v2341_v8, -inf  ;;  %v2352_v55 = vadd.f32 %v3972_v58, %v3169_v22 }
0x11c8   :  { %v2343_v40 = vpop.f32.mrf.mxu0  ;;  %2356 = vmax.xlane.f32.xlu1 %v2355_v47 }
0x11c9   :  { %v2344_v54 = vadd.f32 %v3966_v12, %v2343_v40  ;;  %v2364_v10 = vsel %vm910_vm1, %v2352_v55, -inf }
0x11cb   :  { %v2358_v4 = vsel %vm910_vm1, %v2344_v54, -inf }
0x11cc   :  { %2359 = vmax.xlane.f32.xlu0 %v2358_v4  ;;  %2362 = vmax.xlane.f32.xlu1 %v2361_v7 }
0x11d0   :  { %2365 = vmax.xlane.f32.xlu1 %v2364_v10 }
0x11e1   :  { %209 = vperm.xlu1 %3213, %v103_v15  }
0x11e2   :  { %214 = vperm.xlu0 %3212, %v104_v16  }
0x11e5   :  { %359 = vperm.xlu1 %3213, %v133_v62  }
0x1251   :  { %v2357_v34 = vpop.xlane.xlu1 %2356 }
0x1252   :  { %v2367_v3 = vsub.f32 %v2341_v8, %v2357_v34 }
0x1254   :  { %v2371_v21 = vmul.f32 1.442695, %v2367_v3 }
0x1255   :  { %v2360_v43 = vpop.xlane.xlu0 %2359  ;;  %v2363_v6 = vpop.xlane.xlu1 %2362 }
0x1256   :  { %v2369_v24 = vsub.f32 %v2349_v45, %v2363_v6  ;;  %v2368_v39 = vsub.f32 %v2344_v54, %v2360_v43 }
0x1258   :  { %v2375_v9 = vmul.f32 1.442695, %v2369_v24  ;;  %v2373_v25 = vmul.f32 1.442695, %v2368_v39  ;;  %v3252_v24 = vld [vmem:[%s4133_s4 + $0x30] sm:$0xff]  }
0x1259   :  { %v2366_v51 = vpop.xlane.xlu1 %2365  ;;  %3176 = vmatprep.subr.bf16.mxu0 %v3252_v24 }
0x125a   :  { %v2370_v49 = vsub.f32 %v2352_v55, %v2366_v51  ;;  %3350 = vpow2.f32 %v2375_v9  ;;  %3177 = vmatpush3.bf16.msra.mxu0 %v3252_v24 }
0x125b   :  { %3352 = vpow2.f32 %v2371_v21 }
0x125c   :  { %v2377_v26 = vmul.f32 1.442695, %v2370_v49 }
0x125d   :  { %v215_v35 = vpop.permute.xlu0 %214  ;;  %v210_v31 = vpop.permute.xlu1 %209 }
0x125e   :  { %3354 = vpow2.f32 %v2377_v26  ;;  %v663_v38 = vadd.f32 %v3561_v50, %v215_v35  ;;  %v660_v17 = vadd.f32 %v3557_v48, %v210_v31 }
0x125f   :  { %3356 = vpow2.f32 %v2373_v25 }
0x1260   :  { %v801_v5 = vpack.c.bf16 %v663_v38, %v660_v17 }
0x1261   :  { %v360_v42 = vpop.permute.xlu1 %359 }
0x1262   :  { %v780_v40 = vadd.f32 %v4023_v63, %v360_v42 }
0x1267   :  { %v3351_v27 = vpop.eup %3350 }
0x1268   :  { %v2385_v52 = vsel %vm910_vm1, %v3351_v27, 0.0  ;;  %v3353_v56 = vpop.eup %3352 }
0x1269   :  { %2386 = vadd.xlane.f32.xlu1 %v2385_v52  ;;  %v2379_v41 = vsel %vm910_vm1, %v3353_v56, 0.0 }
0x126b   :  { %v3355_v20 = vpop.eup %3354 }
0x126c   :  { %v2388_v28 = vsel %vm910_vm1, %v3355_v20, 0.0  ;;  %v3357_v57 = vpop.eup %3356 }
0x126d   :  { %2389 = vadd.xlane.f32.xlu0 %v2388_v28  ;;  %2380 = vadd.xlane.f32.xlu1 %v2379_v41  ;;  %v2382_v2 = vsel %vm910_vm1, %v3357_v57, 0.0 }
0x1271   :  { %2383 = vadd.xlane.f32.xlu0 %v2382_v2 }
0x127e   :  { %289 = vperm.xlu1 %3213, %v119_v23  }
0x1282   :  { %294 = vperm.xlu1 %3213, %v120_v13  }
0x1284   :  { %v3162_v30 = vpop.f32.mrf.mxu1 }
0x1285   :  { %v4062_v29 = vadd.f32 %v3162_v30, %v3939_v53 }
0x1286   :  { %v2265_v60 = vpop.f32.mrf.mxu1 }
0x1287   :  { %v4065_v32 = vadd.f32 %v2265_v60, %v3942_v61  ;;  %364 = vperm.xlu0 %3212, %v134_v59  }
0x1288   :  { %v3163_v44 = vpop.f32.mrf.mxu1 }
0x1289   :  { %v4068_v46 = vadd.f32 %v3163_v44, %v3945_v19 }
0x128a   :  { %v4085_v39 = vpop.f32.mrf.mxu1 }
0x12a5   :  { %2526 = vxpose.xlu0.c.b16.start.end [1/1] (short) (narrow) %v801_v5, 32 }
0x12f2   :  { %v2387_v53 = vpop.xlane.xlu1 %2386 }
0x12f6   :  { %v2390_v8 = vpop.xlane.xlu0 %2389  ;;  %v2381_v22 = vpop.xlane.xlu1 %2380 }
0x12f7   :  { %3358 = vrcp.f32 %v2390_v8 }
0x12f8   :  { %3360 = vrcp.f32 %v2381_v22 }
0x12f9   :  { %3362 = vrcp.f32 %v2387_v53 }
0x12fa   :  { %v2384_v61 = vpop.xlane.xlu0 %2383  ;;  %v290_v45 = vpop.permute.xlu1 %289 }
0x12fb   :  { %3364 = vrcp.f32 %v2384_v61  ;;  %v724_v55 = vadd.f32 %v3648_v33, %v290_v45 }
0x12fe   :  { %v295_v19 = vpop.permute.xlu1 %294 }
0x12ff   :  { %v727_v50 = vadd.f32 %v3652_v11, %v295_v19 }
0x1301   :  { %v809_v15 = vpack.c.bf16 %v727_v50, %v724_v55  ;;  %v135_v50 = vld [vmem:[%s4132_s3 + $0x170] sm:$0xff] }
0x1302   :  { %v365_v47 = vpop.permute.xlu0 %364 }
0x1303   :  { %v783_v48 = vadd.f32 %v4027_v37, %v365_v47 }
0x1304   :  { %v3359_v54 = vpop.eup %3358 }
0x1305   :  { %v816_v4 = vpack.c.bf16 %v783_v48, %v780_v40  ;;  %v3361_v7 = vpop.eup %3360  ;;  %v2398_v3 = vmul.f32 %v3359_v54, %v3355_v20  ;;  %v136_v54 = vld [vmem:[%s4132_s3 + $0x178] sm:$0xff] }
0x1306   :  { %v3363_v10 = vpop.eup %3362  ;;  %v2395_v34 = vmul.f32 %v3361_v7, %v3353_v56 }
0x1307   :  { %3206 = vmatprep.subr.msk.bf16.mxu1 %vm910_vm1, %v816_v4  ;;  %v2408_v16 = vsel %vm910_vm1, %v816_v4, 0  ;;  %v2397_v43 = vmul.f32 %v3363_v10, %v3351_v27  ;;  %v2534_v33 = vpop.trf.xlu0 }
0x1308   :  { %v3365_v62 = vpop.eup %3364  ;;  %3171 = vmatpush3.bf16.xpose.msra.mxu1 %v2408_v16 }
0x1309   :  { %3182 = vmatprep.subr.bf16.mxu1 %v809_v15  ;;  %v2396_v63 = vmul.f32 %v3365_v62, %v3357_v57  ;;  %v2400_v37 = vpack.c.bf16 %v2398_v3, %v2397_v43 }
0x130b   :  { %v2399_v11 = vpack.c.bf16 %v2396_v63, %v2395_v34  ;;  %v2535_v6 = vpop.trf.xlu0 }
0x130d   :  { %3172 = vmatprep.mubr.msk.bf16.mxu1 %vm910_vm1, %v2399_v11 }
0x130f   :  { %3173 = vmatmul.mubr.msk.bf16.vlgmr.msra.gmra.mxu1 %vm910_vm1, %v2400_v37 }
0x1310   :  { %3183 = vmatpush3.bf16.msra.mxu1 %v809_v15  ;;  %3184 = vmatprep.mubr.msk.bf16.mxu1 %vm854_vm0, %v2534_v33 }
0x1317   :  { %3185 = vmatmul.mubr.msk.bf16.vlgmr.msra.gmra.mxu1 %vm854_vm0, %v2535_v6 }
0x13cf   :  { %v3174_v9 = vpop.f32.mrf.mxu1 }
0x13d1   :  { %v2444_v21 = vpop.f32.mrf.mxu1 }
0x13d3   :  { %v3175_v51 = vpop.f32.mrf.mxu1 }
0x13d4   :  { %v2460_v26 = vpack.c.bf16 %v3175_v51, %v3174_v9 }
0x13d5   :  { %v2447_v49 = vpop.f32.mrf.mxu1 }
0x13d6   :  { %v2459_v25 = vpack.c.bf16 %v2447_v49, %v2444_v21 }
0x13d7   :  { %v3186_v27 = vpop.f32.mrf.mxu1 }
0x13d8   :  { %3178 = vmatprep.mubr.msk.bf16.mxu0 %vm854_vm0, %v2459_v25  ;;  %v2591_v28 = vadd.f32 %v3959_v14, %v3186_v27 }
0x13d9   :  { %3179 = vmatmul.mubr.msk.bf16.vlgmr.msra.gmra.mxu0 %vm854_vm0, %v2460_v26  ;;  %v2582_v52 = vpop.f32.mrf.mxu1 }
0x13da   :  { %v2583_v56 = vadd.f32 %v3953_v36, %v2582_v52  ;;  %v2603_v30 = vsel %vm910_vm1, %v2591_v28, -inf }
0x13db   :  { %v3187_v20 = vpop.f32.mrf.mxu1 }
0x13dc   :  { %v2597_v57 = vsel %vm910_vm1, %v2583_v56, -inf  ;;  %v2594_v23 = vadd.f32 %v3972_v58, %v3187_v20 }
0x13dd   :  { %v2585_v41 = vpop.f32.mrf.mxu1  ;;  %2598 = vmax.xlane.f32.xlu1 %v2597_v57 }
0x13de   :  { %v2586_v2 = vadd.f32 %v3966_v12, %v2585_v41  ;;  %v2606_v59 = vsel %vm910_vm1, %v2594_v23, -inf }
0x13e0   :  { %v2600_v13 = vsel %vm910_vm1, %v2586_v2, -inf }
0x13e1   :  { %2601 = vmax.xlane.f32.xlu0 %v2600_v13  ;;  %2604 = vmax.xlane.f32.xlu1 %v2603_v30  ;;  %v2281_v30 = vadd.f32 %v4085_v39, %v3948_v18 }
0x13e5   :  { %2607 = vmax.xlane.f32.xlu1 %v2606_v59 }
0x1466   :  { %v2599_v36 = vpop.xlane.xlu1 %2598 }
0x1467   :  { %v2609_v60 = vsub.f32 %v2583_v56, %v2599_v36 }
0x1469   :  { %v2613_v17 = vmul.f32 1.442695, %v2609_v60 }
0x146a   :  { %v2602_v14 = vpop.xlane.xlu0 %2601  ;;  %v2605_v44 = vpop.xlane.xlu1 %2604 }
0x146b   :  { %v2611_v35 = vsub.f32 %v2591_v28, %v2605_v44  ;;  %v2610_v31 = vsub.f32 %v2586_v2, %v2602_v14  ;;  %v2887_v2 = vld [vmem:[%s4134_s5] ss:$0 sm:$0xff] }
0x146d   :  { %v2617_v38 = vmul.f32 1.442695, %v2611_v35  ;;  %v2615_v58 = vmul.f32 1.442695, %v2610_v31 }
0x146e   :  { %v2608_v12 = vpop.xlane.xlu1 %2607 }
0x146f   :  { %v2612_v5 = vsub.f32 %v2594_v23, %v2608_v12  ;;  %3366 = vpow2.f32 %v2617_v38 }
0x1470   :  { %3368 = vpow2.f32 %v2613_v17 }
0x1471   :  { %v2619_v42 = vmul.f32 1.442695, %v2612_v5 }
0x1473   :  { %3370 = vpow2.f32 %v2619_v42 }
0x1474   :  { %3372 = vpow2.f32 %v2615_v58 }
0x147c   :  { %v3367_v53 = vpop.eup %3366 }
0x147d   :  { %v2627_v8 = vsel %vm910_vm1, %v3367_v53, 0.0  ;;  %v3369_v22 = vpop.eup %3368 }
0x147e   :  { %2628 = vadd.xlane.f32.xlu1 %v2627_v8  ;;  %v2621_v47 = vsel %vm910_vm1, %v3369_v22, 0.0 }
0x1480   :  { %v3371_v61 = vpop.eup %3370 }
0x1481   :  { %v2630_v45 = vsel %vm910_vm1, %v3371_v61, 0.0  ;;  %v3373_v19 = vpop.eup %3372 }
0x1482   :  { %2631 = vadd.xlane.f32.xlu0 %v2630_v45  ;;  %2622 = vadd.xlane.f32.xlu1 %v2621_v47  ;;  %v2624_v40 = vsel %vm910_vm1, %v3373_v19, 0.0 }
0x1486   :  { %2625 = vadd.xlane.f32.xlu0 %v2624_v40 }
0x1493   :  { %369 = vperm.xlu1 %3213, %v135_v50  }
0x1499   :  { %v3180_v48 = vpop.f32.mrf.mxu0 }
0x149a   :  { %v2524_v55 = vadd.f32 %v3180_v48, %v4062_v29 }
0x149b   :  { %v2507_v4 = vpop.f32.mrf.mxu0 }
0x149c   :  { %v2522_v7 = vadd.f32 %v2507_v4, %v4065_v32  ;;  %374 = vperm.xlu0 %3212, %v136_v54  }
0x149d   :  { %v3181_v10 = vpop.f32.mrf.mxu0 }
0x149e   :  { %v2525_v15 = vadd.f32 %v3181_v10, %v4068_v46 }
0x149f   :  { %v2510_v26 = vpop.f32.mrf.mxu0 }
0x14a0   :  { %v2523_v14 = vadd.f32 %v2510_v26, %v2281_v30 }
0x1507   :  { %v2629_v16 = vpop.xlane.xlu1 %2628 }
0x150b   :  { %v2632_v62 = vpop.xlane.xlu0 %2631  ;;  %v2623_v34 = vpop.xlane.xlu1 %2622 }
0x150c   :  { %3374 = vrcp.f32 %v2632_v62 }
0x150d   :  { %3376 = vrcp.f32 %v2623_v34 }
0x150e   :  { %3378 = vrcp.f32 %v2629_v16 }
0x150f   :  { %v2626_v63 = vpop.xlane.xlu0 %2625  ;;  %v370_v3 = vpop.permute.xlu1 %369 }
0x1510   :  { %3380 = vrcp.f32 %v2626_v63  ;;  %v788_v43 = vadd.f32 %v4021_v0, %v370_v3 }
0x1517   :  { %v375_v11 = vpop.permute.xlu0 %374 }
0x1518   :  { %v791_v29 = vadd.f32 %v4025_v1, %v375_v11  ;;  %v3253_v1 = vld [vmem:[%s4133_s4 + $0x38] sm:$0xff]   ;;  %s3409_s4 = smov [#allocation2]  }
0x1519   :  { %v3375_v37 = vpop.eup %3374  ;;  %3194 = vmatprep.subr.bf16.mxu1 %v3253_v1  ;;  %s2788_s12 = sshll.u32 %s3409_s4, 4  ;;  %s2789_s12 = int_to_ptr.vmem [resolvable:$true] %s2788_s12 }
0x151a   :  { %v817_v32 = vpack.c.bf16 %v791_v29, %v788_v43  ;;  %v3377_v33 = vpop.eup %3376  ;;  %v2640_v51 = vmul.f32 %v3375_v37, %v3371_v61  ;;  %3195 = vmatpush3.bf16.msra.mxu1 %v3253_v1  ;;  %s3386_s5 = scalar_lea.vmem %s2789_s12, 512  ;;  %p3391_p1 = scmp.lt.s32.totalorder %s2789_s12, %s2789_s12 }
0x151b   :  { %v3379_v6 = vpop.eup %3378  ;;  %v2637_v9 = vmul.f32 %v3377_v33, %v3369_v22  ;;  %p3387_p0 = scmp.ne.s32.totalorder %s2789_s12, %s3386_s5  ;;  %p3392_p2 = scmp.lt.s32.totalorder %s3386_s5, %s3386_s5 }
0x151c   :  { %3207 = vmatprep.subr.msk.bf16.mxu0 %vm910_vm1, %v817_v32  ;;  %v2650_v46 = vsel %vm910_vm1, %v817_v32, 0  ;;  %v2639_v25 = vmul.f32 %v3379_v6, %v3367_v53 }
0x151d   :  { %v3381_v24 = vpop.eup %3380  ;;  %3189 = vmatpush3.bf16.xpose.msra.mxu0 %v2650_v46  ;;  %p3393_p3 = por %p3392_p2, %p3391_p1 }
0x151e   :  { %v2638_v21 = vmul.f32 %v3381_v24, %v3373_v19  ;;  %v2642_v0 = vpack.c.bf16 %v2640_v51, %v2639_v25 }
0x151f   :  { %p3394_p4 = pnand %p3393_p3, %p3387_p0 }
0x1520   :  { %v2641_v49 = vpack.c.bf16 %v2638_v21, %v2637_v9 }
0x1522   :  { %3190 = vmatprep.mubr.msk.bf16.mxu0 %vm910_vm1, %v2641_v49 }
0x1524   :  { %3191 = vmatmul.mubr.msk.bf16.vlgmr.msra.gmra.mxu0 %vm910_vm1, %v2642_v0 }
0x15e4   :  { %v3192_v27 = vpop.f32.mrf.mxu0 }
0x15e6   :  { %v2686_v52 = vpop.f32.mrf.mxu0 }
0x15e8   :  { %v3193_v56 = vpop.f32.mrf.mxu0 }
0x15e9   :  { %v2702_v57 = vpack.c.bf16 %v3193_v56, %v3192_v27 }
0x15ea   :  { %v2689_v20 = vpop.f32.mrf.mxu0 }
0x15eb   :  { %v2701_v28 = vpack.c.bf16 %v2689_v20, %v2686_v52 }
0x15ed   :  { %3196 = vmatprep.mubr.msk.bf16.mxu1 %vm854_vm0, %v2701_v28 }
0x15ee   :  { %3197 = vmatmul.mubr.msk.bf16.vlgmr.msra.gmra.mxu1 %vm854_vm0, %v2702_v57 }
0x16ae   :  { %v3198_v41 = vpop.f32.mrf.mxu1 }
0x16af   :  { %v2766_v23 = vadd.f32 %v3198_v41, %v2524_v55 }
0x16b0   :  { %v2749_v13 = vpop.f32.mrf.mxu1 }
0x16b1   :  { %v2777_v59 = vadd.f32 %v2887_v2, %v2766_v23  ;;  %v2764_v36 = vadd.f32 %v2749_v13, %v2522_v7 }
0x16b2   :  { %v3199_v60 = vpop.f32.mrf.mxu1 }
0x16b3   :  { %2781 = vst [vmem:[#allocation2 + $0x10] sm:$0xff] %v2777_v59  ;;  %v2775_v44 = vadd.f32 %v2887_v2, %v2764_v36  ;;  %v2767_v35 = vadd.f32 %v3199_v60, %v2525_v15 }
0x16b4   :  { %v2752_v31 = vpop.f32.mrf.mxu1 }
0x16b5   :  { %2779 = vst [vmem:[#allocation2] sm:$0xff] %v2775_v44  ;;  %v2778_v38 = vadd.f32 %v2887_v2, %v2767_v35  ;;  %v2765_v17 = vadd.f32 %v2752_v31, %v2523_v14 }
0x16b7   :  { %2782 = vst [vmem:[#allocation2 + $0x18] sm:$0xff] %v2778_v38  ;;  %v2776_v12 = vadd.f32 %v2887_v2, %v2765_v17 }
0x16b9   :  { %2780 = vst [vmem:[#allocation2 + $0x8] sm:$0xff] %v2776_v12 }
0x16ba   :  { %3397 = shalt.err (!%p3394_p4)
}
0x16bb   :  { %s3410_s13 = smov 128   ;;  %s3411_s14 = smov 8  }
0x16bc   :  { %2794 = dma.vmem_to_hbm [thread:$0]  %s2789_s12, 512, %s4135_s6, [#allocation3], %s3410_s13, %s3410_s13, %s3411_s14  }
0x16bd   :  { %3406 = dma.done.wait [#allocation3], 512  }
0x16be   :  { %3407 = vsyncadd [#allocation3], 4294966784 }
0x16bf   :  { %2798 = vsyncpa [#allocation3], 1 }

</bundles_post_ra>
